<compile_context>
chip_gen: v6e
topology: v6e:2x2x1
jax: 0.10.0
libtpu: 0.0.40
codegen_flags: <defaults>
</compile_context>

<pallas_src>
import functools

import numpy as np

import jax
import jax.numpy as jnp
from jax import lax
from jax.experimental import pallas as pl
from jax.experimental.pallas import tpu as pltpu


LANE = 128  # final conv output padded to this many lanes for dense stores


# ----------------------------- in-kernel helpers -----------------------------

def _elu(x):
    # PyTorch ELU(alpha=1): x if x > 0 else exp(x) - 1
    # (exp(x) - 1 == expm1(x) to well within the test tolerance; exp has a
    #  guaranteed Mosaic/EUP lowering.)
    return jnp.where(x > 0, x, jnp.exp(x) - 1.0)


def _dot(a, b):
    return jnp.dot(a, b, preferred_element_type=jnp.float32)


# --------------------------------- kernel ------------------------------------

def decoder_kernel(x_ref, w_in_ref, b_in_ref, wt_ref, bt_ref,
                   s0_ref, s1_ref, m0_ref, m1_ref,
                   wa_ref, ba_ref, wb_ref, bb_ref,
                   w_out_ref, b_out_ref, o_ref, *, n_res_blocks):
    """Entire decoder forward in one invocation on a (B*L, C) activation slab."""
    # Conv1d(in_c -> ch, k=1) + ELU
    h = _elu(_dot(x_ref[...], w_in_ref[...]) + b_in_ref[...])

    s_refs = (s0_ref, s1_ref)   # per-stage (2, B*L_out, B*L_in) interleave matrices
    m_refs = (m0_ref, m1_ref)   # per-stage (2, B*L_out, 1) boundary masks

    for stage in range(2):
        # ConvTranspose1d(ch -> ch, k=2, s=2, p=1):
        #   y[b, 2j]   = h[b, j]   @ W[:, :, 1]
        #   y[b, 2j+1] = h[b, j+1] @ W[:, :, 0]     (out length 2L - 2)
        # Tap matmuls are batch-folded; the even/odd interleave is applied with
        # two tiny host-precomputed 0/1 matrices (hoisted constants).
        even = _dot(h, wt_ref[stage, 1])            # (B*L, C)
        odd = _dot(h, wt_ref[stage, 0])             # (B*L, C)
        h = _elu(_dot(s_refs[stage][0], even)
                 + _dot(s_refs[stage][1], odd)
                 + bt_ref[stage])                   # (B*L_out, C)

        mask_prev = m_refs[stage][0]                # (B*L_out, 1)
        mask_next = m_refs[stage][1]
        c = h.shape[1]
        zrow = jnp.zeros((1, c), h.dtype)

        for j in range(n_res_blocks):
            idx = stage * n_res_blocks + j
            t = _elu(h)
            # Conv1d(k=3, padding=1): neighbours via one-row sublane shifts;
            # masks zero the taps that would cross a sequence / batch boundary
            # inside the folded (B*L) row axis.
            t_prev = jnp.concatenate([zrow, t[:-1, :]], axis=0) * mask_prev
            t_next = jnp.concatenate([t[1:, :], zrow], axis=0) * mask_next
            y = (_dot(t_prev, wa_ref[idx, 0])
                 + _dot(t, wa_ref[idx, 1])
                 + _dot(t_next, wa_ref[idx, 2])
                 + ba_ref[idx])
            t = _dot(_elu(y), wb_ref[idx]) + bb_ref[idx]
            h = h + t

    # Conv1d(ch -> out_c, k=1); weights zero-padded to 128 output lanes so the
    # final store is a full-lane (unmasked) write.
    o_ref[...] = _dot(h, w_out_ref[...]) + b_out_ref[...]


# ------------------------- wrapper-side constant tensors ----------------------

def _interleave_matrices(batch, l_in):
    """0/1 matrices realizing the stride-2 transposed-conv even/odd interleave."""
    l_out = 2 * l_in - 2
    s_even = np.zeros((batch * l_out, batch * l_in), dtype=np.float32)
    s_odd = np.zeros((batch * l_out, batch * l_in), dtype=np.float32)
    for b in range(batch):
        for j in range(l_in - 1):
            s_even[b * l_out + 2 * j, b * l_in + j] = 1.0
            s_odd[b * l_out + 2 * j + 1, b * l_in + j + 1] = 1.0
    # TODO(synk): these grow as O((B*L)^2); for long sequences switch to an
    # in-kernel roll/reshape interleave + L-tiling (v7x VMEM is only 64 MiB).
    return jnp.asarray(np.stack([s_even, s_odd], axis=0))


def _boundary_masks(batch, l):
    """Masks zeroing k=3-conv taps that cross sequence / batch boundaries."""
    pos = np.arange(batch * l) % l
    prev_ok = (pos != 0).astype(np.float32).reshape(-1, 1)
    next_ok = (pos != l - 1).astype(np.float32).reshape(-1, 1)
    return jnp.asarray(np.stack([prev_ok, next_ok], axis=0))  # (2, B*l, 1)


def decoder_forward(x_blc, kp, n_res_blocks=2):
    """x_blc: (B, L0, Cin) channels-last. Returns (B, 4*L0 - 6, out_channel)."""
    B, L0, Cin = x_blc.shape
    L1 = 2 * L0 - 2
    L2 = 2 * L1 - 2
    Cout = kp["cout"]
    pad_out = kp["w_out"].shape[1]

    x_flat = x_blc.reshape(B * L0, Cin)

    s0 = _interleave_matrices(B, L0)
    s1 = _interleave_matrices(B, L1)
    m0 = _boundary_masks(B, L1)
    m1 = _boundary_masks(B, L2)

    kernel = functools.partial(decoder_kernel, n_res_blocks=n_res_blocks)
    out_flat = pl.pallas_call(
        kernel,
        out_shape=jax.ShapeDtypeStruct((B * L2, pad_out), jnp.float32),
        compiler_params=pltpu.CompilerParams(vmem_limit_bytes=32 * 1024 * 1024),
    )(x_flat, kp["w_in"], kp["b_in"], kp["wt"], kp["bt"],
      s0, s1, m0, m1,
      kp["wa"], kp["ba"], kp["wb"], kp["bb"],
      kp["w_out"], kp["b_out"])

    return out_flat[:, :Cout].reshape(B, L2, Cout)


# --------------------------- params (deterministic) ---------------------------

def init_torch_params(key, in_channel, out_channel, channel, res_channel,
                      n_res_blocks=2):
    keys = iter(jax.random.split(key, 64))
    scale = 0.1

    def rnd(shape):
        return scale * jax.random.normal(next(keys), shape, dtype=jnp.float32)

    n_res = 2 * n_res_blocks
    tp = {
        "conv_in_w": rnd((channel, in_channel, 1)),
        "conv_in_b": rnd((channel,)),
        "up_w": [rnd((channel, channel, 2)) for _ in range(2)],
        "up_b": [rnd((channel,)) for _ in range(2)],
        "res_wa": [rnd((res_channel, channel, 3)) for _ in range(n_res)],
        "res_ba": [rnd((res_channel,)) for _ in range(n_res)],
        "res_wb": [rnd((channel, res_channel, 1)) for _ in range(n_res)],
        "res_bb": [rnd((channel,)) for _ in range(n_res)],
        "conv_out_w": rnd((out_channel, channel, 1)),
        "conv_out_b": rnd((out_channel,)),
    }
    return tp


def to_kernel_params(tp, lane=LANE):
    """Convert torch-layout weights (O,I,K) / (I,O,K) to the kernel layouts."""
    cout = tp["conv_out_w"].shape[0]
    pad_out = ((cout + lane - 1) // lane) * lane

    w_out = jnp.transpose(tp["conv_out_w"][:, :, 0], (1, 0))        # (C, Cout)
    b_out = tp["conv_out_b"][None, :]                               # (1, Cout)
    w_out = jnp.pad(w_out, ((0, 0), (0, pad_out - cout)))           # (C, 128)
    b_out = jnp.pad(b_out, ((0, 0), (0, pad_out - cout)))           # (1, 128)

    kp = {
        "w_in": jnp.transpose(tp["conv_in_w"][:, :, 0], (1, 0)),    # (Cin, C)
        "b_in": tp["conv_in_b"][None, :],                           # (1, C)
        # ConvTranspose1d weight (Cin, Cout, K=2) -> (stage, K, Cin, Cout)
        "wt": jnp.stack([jnp.transpose(w, (2, 0, 1)) for w in tp["up_w"]]),
        "bt": jnp.stack([b[None, :] for b in tp["up_b"]]),          # (2, 1, C)
        # Conv1d(k=3) weight (R, C, 3) -> (block, K, C, R); tap k pairs x[l+k-1]
        "wa": jnp.stack([jnp.transpose(w, (2, 1, 0)) for w in tp["res_wa"]]),
        "ba": jnp.stack([b[None, :] for b in tp["res_ba"]]),        # (n, 1, R)
        "wb": jnp.stack([jnp.transpose(w[:, :, 0], (1, 0)) for w in tp["res_wb"]]),
        "bb": jnp.stack([b[None, :] for b in tp["res_bb"]]),        # (n, 1, C)
        "w_out": w_out,
        "b_out": b_out,
        "cout": cout,
    }
    return kp


# ------------------------------ pure-JAX reference ----------------------------

def decoder_reference(x_ncl, tp, n_res_blocks=2):
    def conv1d(x, w, b, padding):
        y = lax.conv_general_dilated(
            x, w, window_strides=(1,), padding=[(padding, padding)],
            dimension_numbers=("NCH", "OIH", "NCH"))
        return y + b[None, :, None]

    def conv_transpose1d(x, w, b):  # k=2, stride=2, padding=1
        wr = jnp.transpose(w, (1, 0, 2))[:, :, ::-1]
        y = lax.conv_general_dilated(
            x, wr, window_strides=(1,), padding=[(0, 0)], lhs_dilation=(2,),
            dimension_numbers=("NCH", "OIH", "NCH"))
        return y + b[None, :, None]

    def elu(x):
        return jnp.where(x > 0, x, jnp.expm1(x))

    h = elu(conv1d(x_ncl, tp["conv_in_w"], tp["conv_in_b"], 0))
    for stage in range(2):
        h = elu(conv_transpose1d(h, tp["up_w"][stage], tp["up_b"][stage]))
        for j in range(n_res_blocks):
            idx = stage * n_res_blocks + j
            t = elu(h)
            t = conv1d(t, tp["res_wa"][idx], tp["res_ba"][idx], 1)
            t = elu(t)
            t = conv1d(t, tp["res_wb"][idx], tp["res_bb"][idx], 0)
            h = h + t
    return conv1d(h, tp["conv_out_w"], tp["conv_out_b"], 0)


# ----------------------------------- main -------------------------------------

if __name__ == "__main__":
    B = 2
    L0 = 8            # input (latent) sequence length
    in_channel = 8
    out_channel = 16
    channel = 32
    res_channel = 16
    n_res_blocks = 2

    key = jax.random.PRNGKey(0)
    k_x, k_p = jax.random.split(key)

    # PyTorch-style NCL input, then channels-last (B, L, C) for the kernel.
    x_ncl = jax.random.normal(k_x, (B, in_channel, L0), dtype=jnp.float32)
    x_blc = jnp.transpose(x_ncl, (0, 2, 1))

    tp = init_torch_params(k_p, in_channel, out_channel, channel, res_channel,
                           n_res_blocks)
    kp = to_kernel_params(tp)

    out = decoder_forward(x_blc, kp, n_res_blocks=n_res_blocks)
    out = jax.block_until_ready(out)            # (B, 4*L0 - 6, out_channel)

    ref = decoder_reference(x_ncl, tp, n_res_blocks=n_res_blocks)
    ref_blc = jnp.transpose(ref, (0, 2, 1))

    max_err = float(jnp.max(jnp.abs(out - ref_blc)))
    assert out.shape == (B, 4 * L0 - 6, out_channel), out.shape
    assert max_err < 1e-3, f"mismatch vs reference: max abs err {max_err}"

    print("KERNEL_OK")
</pallas_src>

<mosaic_0001>
module attributes {stable_mosaic.version = 11 : i64} {
  func.func @decoder_kernel(%arg0: memref<16x8xf32, #tpu.memory_space<vmem>>, %arg1: memref<8x32xf32, #tpu.memory_space<vmem>>, %arg2: memref<1x32xf32, #tpu.memory_space<vmem>>, %arg3: memref<2x2x32x32xf32, #tpu.memory_space<vmem>>, %arg4: memref<2x1x32xf32, #tpu.memory_space<vmem>>, %arg5: memref<2x28x16xf32, #tpu.memory_space<vmem>>, %arg6: memref<2x52x28xf32, #tpu.memory_space<vmem>>, %arg7: memref<2x28x1xf32, #tpu.memory_space<vmem>>, %arg8: memref<2x52x1xf32, #tpu.memory_space<vmem>>, %arg9: memref<4x3x32x16xf32, #tpu.memory_space<vmem>>, %arg10: memref<4x1x16xf32, #tpu.memory_space<vmem>>, %arg11: memref<4x16x32xf32, #tpu.memory_space<vmem>>, %arg12: memref<4x1x32xf32, #tpu.memory_space<vmem>>, %arg13: memref<32x128xf32, #tpu.memory_space<vmem>>, %arg14: memref<1x128xf32, #tpu.memory_space<vmem>>, %arg15: memref<52x128xf32, #tpu.memory_space<vmem>>) attributes {dimension_semantics = [], scalar_prefetch = 0 : i64, scratch_operands = 0 : i64, tpu.core_type = #tpu.core_type<tc>} {
    %c0 = arith.constant 0 : index
    %c0_0 = arith.constant 0 : index
    %0 = vector.load %arg0[%c0, %c0_0] : memref<16x8xf32, #tpu.memory_space<vmem>>, vector<16x8xf32>
    %c0_1 = arith.constant 0 : index
    %c0_2 = arith.constant 0 : index
    %1 = vector.load %arg1[%c0_1, %c0_2] : memref<8x32xf32, #tpu.memory_space<vmem>>, vector<8x32xf32>
    %cst = arith.constant dense<0.000000e+00> : vector<16x32xf32>
    %2 = tpu.matmul %0, %1, %cst {dimension_numbers = #tpu.dot_dimension_numbers<[1], [0], [0], [1], [0, 0, 1, 1], [], []>} : vector<16x8xf32>, vector<8x32xf32>, vector<16x32xf32> -> vector<16x32xf32>
    %c0_3 = arith.constant 0 : index
    %c0_4 = arith.constant 0 : index
    %3 = vector.load %arg2[%c0_3, %c0_4] : memref<1x32xf32, #tpu.memory_space<vmem>>, vector<1x32xf32>
    %4 = vector.broadcast %3 : vector<1x32xf32> to vector<16x32xf32>
    %5 = arith.addf %2, %4 : vector<16x32xf32>
    %cst_5 = arith.constant 0.000000e+00 : f32
    %6 = vector.broadcast %cst_5 : f32 to vector<16x32xf32>
    %7 = arith.cmpf ogt, %5, %6 : vector<16x32xf32>
    %8 = math.exp %5 : vector<16x32xf32>
    %cst_6 = arith.constant 1.000000e+00 : f32
    %9 = vector.broadcast %cst_6 : f32 to vector<16x32xf32>
    %10 = arith.subf %8, %9 : vector<16x32xf32>
    %11 = arith.select %7, %5, %10 : vector<16x32xi1>, vector<16x32xf32>
    %c0_7 = arith.constant 0 : index
    %c1 = arith.constant 1 : index
    %c0_8 = arith.constant 0 : index
    %c0_9 = arith.constant 0 : index
    %12 = vector.load %arg3[%c0_7, %c1, %c0_8, %c0_9] : memref<2x2x32x32xf32, #tpu.memory_space<vmem>>, vector<1x1x32x32xf32>
    %13 = vector.shape_cast %12 : vector<1x1x32x32xf32> to vector<32x32xf32>
    %cst_10 = arith.constant dense<0.000000e+00> : vector<16x32xf32>
    %14 = tpu.matmul %11, %13, %cst_10 {dimension_numbers = #tpu.dot_dimension_numbers<[1], [0], [0], [1], [0, 0, 1, 1], [], []>} : vector<16x32xf32>, vector<32x32xf32>, vector<16x32xf32> -> vector<16x32xf32>
    %c0_11 = arith.constant 0 : index
    %c0_12 = arith.constant 0 : index
    %c0_13 = arith.constant 0 : index
    %c0_14 = arith.constant 0 : index
    %15 = vector.load %arg3[%c0_11, %c0_12, %c0_13, %c0_14] : memref<2x2x32x32xf32, #tpu.memory_space<vmem>>, vector<1x1x32x32xf32>
    %16 = vector.shape_cast %15 : vector<1x1x32x32xf32> to vector<32x32xf32>
    %cst_15 = arith.constant dense<0.000000e+00> : vector<16x32xf32>
    %17 = tpu.matmul %11, %16, %cst_15 {dimension_numbers = #tpu.dot_dimension_numbers<[1], [0], [0], [1], [0, 0, 1, 1], [], []>} : vector<16x32xf32>, vector<32x32xf32>, vector<16x32xf32> -> vector<16x32xf32>
    %c0_16 = arith.constant 0 : index
    %c0_17 = arith.constant 0 : index
    %c0_18 = arith.constant 0 : index
    %18 = vector.load %arg5[%c0_16, %c0_17, %c0_18] : memref<2x28x16xf32, #tpu.memory_space<vmem>>, vector<1x28x16xf32>
    %19 = vector.shape_cast %18 : vector<1x28x16xf32> to vector<28x16xf32>
    %cst_19 = arith.constant dense<0.000000e+00> : vector<28x32xf32>
    %20 = tpu.matmul %19, %14, %cst_19 {dimension_numbers = #tpu.dot_dimension_numbers<[1], [0], [0], [1], [0, 0, 1, 1], [], []>} : vector<28x16xf32>, vector<16x32xf32>, vector<28x32xf32> -> vector<28x32xf32>
    %c1_20 = arith.constant 1 : index
    %c0_21 = arith.constant 0 : index
    %c0_22 = arith.constant 0 : index
    %21 = vector.load %arg5[%c1_20, %c0_21, %c0_22] : memref<2x28x16xf32, #tpu.memory_space<vmem>>, vector<1x28x16xf32>
    %22 = vector.shape_cast %21 : vector<1x28x16xf32> to vector<28x16xf32>
    %cst_23 = arith.constant dense<0.000000e+00> : vector<28x32xf32>
    %23 = tpu.matmul %22, %17, %cst_23 {dimension_numbers = #tpu.dot_dimension_numbers<[1], [0], [0], [1], [0, 0, 1, 1], [], []>} : vector<28x16xf32>, vector<16x32xf32>, vector<28x32xf32> -> vector<28x32xf32>
    %24 = arith.addf %20, %23 : vector<28x32xf32>
    %c0_24 = arith.constant 0 : index
    %c0_25 = arith.constant 0 : index
    %c0_26 = arith.constant 0 : index
    %25 = vector.load %arg4[%c0_24, %c0_25, %c0_26] : memref<2x1x32xf32, #tpu.memory_space<vmem>>, vector<1x1x32xf32>
    %26 = vector.shape_cast %25 : vector<1x1x32xf32> to vector<1x32xf32>
    %27 = vector.broadcast %26 : vector<1x32xf32> to vector<28x32xf32>
    %28 = arith.addf %24, %27 : vector<28x32xf32>
    %cst_27 = arith.constant 0.000000e+00 : f32
    %29 = vector.broadcast %cst_27 : f32 to vector<28x32xf32>
    %30 = arith.cmpf ogt, %28, %29 : vector<28x32xf32>
    %31 = math.exp %28 : vector<28x32xf32>
    %cst_28 = arith.constant 1.000000e+00 : f32
    %32 = vector.broadcast %cst_28 : f32 to vector<28x32xf32>
    %33 = arith.subf %31, %32 : vector<28x32xf32>
    %34 = arith.select %30, %28, %33 : vector<28x32xi1>, vector<28x32xf32>
    %c0_29 = arith.constant 0 : index
    %c0_30 = arith.constant 0 : index
    %c0_31 = arith.constant 0 : index
    %35 = vector.load %arg7[%c0_29, %c0_30, %c0_31] : memref<2x28x1xf32, #tpu.memory_space<vmem>>, vector<1x28x1xf32>
    %36 = vector.shape_cast %35 : vector<1x28x1xf32> to vector<28x1xf32>
    %c1_32 = arith.constant 1 : index
    %c0_33 = arith.constant 0 : index
    %c0_34 = arith.constant 0 : index
    %37 = vector.load %arg7[%c1_32, %c0_33, %c0_34] : memref<2x28x1xf32, #tpu.memory_space<vmem>>, vector<1x28x1xf32>
    %38 = vector.shape_cast %37 : vector<1x28x1xf32> to vector<28x1xf32>
    %cst_35 = arith.constant 0.000000e+00 : f32
    %39 = vector.broadcast %cst_35 : f32 to vector<1x32xf32>
    %cst_36 = arith.constant 0.000000e+00 : f32
    %40 = vector.broadcast %cst_36 : f32 to vector<28x32xf32>
    %41 = arith.cmpf ogt, %34, %40 : vector<28x32xf32>
    %42 = math.exp %34 : vector<28x32xf32>
    %cst_37 = arith.constant 1.000000e+00 : f32
    %43 = vector.broadcast %cst_37 : f32 to vector<28x32xf32>
    %44 = arith.subf %42, %43 : vector<28x32xf32>
    %45 = arith.select %41, %34, %44 : vector<28x32xi1>, vector<28x32xf32>
    %46 = vector.extract_strided_slice %45 {offsets = [0, 0], sizes = [27, 32], strides = [1, 1]} : vector<28x32xf32> to vector<27x32xf32>
    %47 = tpu.concatenate %39, %46 in 0 : vector<1x32xf32>, vector<27x32xf32> -> vector<28x32xf32>
    %48 = vector.broadcast %36 : vector<28x1xf32> to vector<28x32xf32>
    %49 = arith.mulf %47, %48 : vector<28x32xf32>
    %50 = vector.extract_strided_slice %45 {offsets = [1, 0], sizes = [27, 32], strides = [1, 1]} : vector<28x32xf32> to vector<27x32xf32>
    %51 = tpu.concatenate %50, %39 in 0 : vector<27x32xf32>, vector<1x32xf32> -> vector<28x32xf32>
    %52 = vector.broadcast %38 : vector<28x1xf32> to vector<28x32xf32>
    %53 = arith.mulf %51, %52 : vector<28x32xf32>
    %c0_38 = arith.constant 0 : index
    %c0_39 = arith.constant 0 : index
    %c0_40 = arith.constant 0 : index
    %c0_41 = arith.constant 0 : index
    %54 = vector.load %arg9[%c0_38, %c0_39, %c0_40, %c0_41] : memref<4x3x32x16xf32, #tpu.memory_space<vmem>>, vector<1x1x32x16xf32>
    %55 = vector.shape_cast %54 : vector<1x1x32x16xf32> to vector<32x16xf32>
    %cst_42 = arith.constant dense<0.000000e+00> : vector<28x16xf32>
    %56 = tpu.matmul %49, %55, %cst_42 {dimension_numbers = #tpu.dot_dimension_numbers<[1], [0], [0], [1], [0, 0, 1, 1], [], []>} : vector<28x32xf32>, vector<32x16xf32>, vector<28x16xf32> -> vector<28x16xf32>
    %c0_43 = arith.constant 0 : index
    %c1_44 = arith.constant 1 : index
    %c0_45 = arith.constant 0 : index
    %c0_46 = arith.constant 0 : index
    %57 = vector.load %arg9[%c0_43, %c1_44, %c0_45, %c0_46] : memref<4x3x32x16xf32, #tpu.memory_space<vmem>>, vector<1x1x32x16xf32>
    %58 = vector.shape_cast %57 : vector<1x1x32x16xf32> to vector<32x16xf32>
    %cst_47 = arith.constant dense<0.000000e+00> : vector<28x16xf32>
    %59 = tpu.matmul %45, %58, %cst_47 {dimension_numbers = #tpu.dot_dimension_numbers<[1], [0], [0], [1], [0, 0, 1, 1], [], []>} : vector<28x32xf32>, vector<32x16xf32>, vector<28x16xf32> -> vector<28x16xf32>
    %60 = arith.addf %56, %59 : vector<28x16xf32>
    %c0_48 = arith.constant 0 : index
    %c2 = arith.constant 2 : index
    %c0_49 = arith.constant 0 : index
    %c0_50 = arith.constant 0 : index
    %61 = vector.load %arg9[%c0_48, %c2, %c0_49, %c0_50] : memref<4x3x32x16xf32, #tpu.memory_space<vmem>>, vector<1x1x32x16xf32>
    %62 = vector.shape_cast %61 : vector<1x1x32x16xf32> to vector<32x16xf32>
    %cst_51 = arith.constant dense<0.000000e+00> : vector<28x16xf32>
    %63 = tpu.matmul %53, %62, %cst_51 {dimension_numbers = #tpu.dot_dimension_numbers<[1], [0], [0], [1], [0, 0, 1, 1], [], []>} : vector<28x32xf32>, vector<32x16xf32>, vector<28x16xf32> -> vector<28x16xf32>
    %64 = arith.addf %60, %63 : vector<28x16xf32>
    %c0_52 = arith.constant 0 : index
    %c0_53 = arith.constant 0 : index
    %c0_54 = arith.constant 0 : index
    %65 = vector.load %arg10[%c0_52, %c0_53, %c0_54] : memref<4x1x16xf32, #tpu.memory_space<vmem>>, vector<1x1x16xf32>
    %66 = vector.shape_cast %65 : vector<1x1x16xf32> to vector<1x16xf32>
    %67 = vector.broadcast %66 : vector<1x16xf32> to vector<28x16xf32>
    %68 = arith.addf %64, %67 : vector<28x16xf32>
    %cst_55 = arith.constant 0.000000e+00 : f32
    %69 = vector.broadcast %cst_55 : f32 to vector<28x16xf32>
    %70 = arith.cmpf ogt, %68, %69 : vector<28x16xf32>
    %71 = math.exp %68 : vector<28x16xf32>
    %cst_56 = arith.constant 1.000000e+00 : f32
    %72 = vector.broadcast %cst_56 : f32 to vector<28x16xf32>
    %73 = arith.subf %71, %72 : vector<28x16xf32>
    %74 = arith.select %70, %68, %73 : vector<28x16xi1>, vector<28x16xf32>
    %c0_57 = arith.constant 0 : index
    %c0_58 = arith.constant 0 : index
    %c0_59 = arith.constant 0 : index
    %75 = vector.load %arg11[%c0_57, %c0_58, %c0_59] : memref<4x16x32xf32, #tpu.memory_space<vmem>>, vector<1x16x32xf32>
    %76 = vector.shape_cast %75 : vector<1x16x32xf32> to vector<16x32xf32>
    %cst_60 = arith.constant dense<0.000000e+00> : vector<28x32xf32>
    %77 = tpu.matmul %74, %76, %cst_60 {dimension_numbers = #tpu.dot_dimension_numbers<[1], [0], [0], [1], [0, 0, 1, 1], [], []>} : vector<28x16xf32>, vector<16x32xf32>, vector<28x32xf32> -> vector<28x32xf32>
    %c0_61 = arith.constant 0 : index
    %c0_62 = arith.constant 0 : index
    %c0_63 = arith.constant 0 : index
    %78 = vector.load %arg12[%c0_61, %c0_62, %c0_63] : memref<4x1x32xf32, #tpu.memory_space<vmem>>, vector<1x1x32xf32>
    %79 = vector.shape_cast %78 : vector<1x1x32xf32> to vector<1x32xf32>
    %80 = vector.broadcast %79 : vector<1x32xf32> to vector<28x32xf32>
    %81 = arith.addf %77, %80 : vector<28x32xf32>
    %82 = arith.addf %34, %81 : vector<28x32xf32>
    %cst_64 = arith.constant 0.000000e+00 : f32
    %83 = vector.broadcast %cst_64 : f32 to vector<28x32xf32>
    %84 = arith.cmpf ogt, %82, %83 : vector<28x32xf32>
    %85 = math.exp %82 : vector<28x32xf32>
    %cst_65 = arith.constant 1.000000e+00 : f32
    %86 = vector.broadcast %cst_65 : f32 to vector<28x32xf32>
    %87 = arith.subf %85, %86 : vector<28x32xf32>
    %88 = arith.select %84, %82, %87 : vector<28x32xi1>, vector<28x32xf32>
    %89 = vector.extract_strided_slice %88 {offsets = [0, 0], sizes = [27, 32], strides = [1, 1]} : vector<28x32xf32> to vector<27x32xf32>
    %90 = tpu.concatenate %39, %89 in 0 : vector<1x32xf32>, vector<27x32xf32> -> vector<28x32xf32>
    %91 = vector.broadcast %36 : vector<28x1xf32> to vector<28x32xf32>
    %92 = arith.mulf %90, %91 : vector<28x32xf32>
    %93 = vector.extract_strided_slice %88 {offsets = [1, 0], sizes = [27, 32], strides = [1, 1]} : vector<28x32xf32> to vector<27x32xf32>
    %94 = tpu.concatenate %93, %39 in 0 : vector<27x32xf32>, vector<1x32xf32> -> vector<28x32xf32>
    %95 = vector.broadcast %38 : vector<28x1xf32> to vector<28x32xf32>
    %96 = arith.mulf %94, %95 : vector<28x32xf32>
    %c1_66 = arith.constant 1 : index
    %c0_67 = arith.constant 0 : index
    %c0_68 = arith.constant 0 : index
    %c0_69 = arith.constant 0 : index
    %97 = vector.load %arg9[%c1_66, %c0_67, %c0_68, %c0_69] : memref<4x3x32x16xf32, #tpu.memory_space<vmem>>, vector<1x1x32x16xf32>
    %98 = vector.shape_cast %97 : vector<1x1x32x16xf32> to vector<32x16xf32>
    %cst_70 = arith.constant dense<0.000000e+00> : vector<28x16xf32>
    %99 = tpu.matmul %92, %98, %cst_70 {dimension_numbers = #tpu.dot_dimension_numbers<[1], [0], [0], [1], [0, 0, 1, 1], [], []>} : vector<28x32xf32>, vector<32x16xf32>, vector<28x16xf32> -> vector<28x16xf32>
    %c1_71 = arith.constant 1 : index
    %c1_72 = arith.constant 1 : index
    %c0_73 = arith.constant 0 : index
    %c0_74 = arith.constant 0 : index
    %100 = vector.load %arg9[%c1_71, %c1_72, %c0_73, %c0_74] : memref<4x3x32x16xf32, #tpu.memory_space<vmem>>, vector<1x1x32x16xf32>
    %101 = vector.shape_cast %100 : vector<1x1x32x16xf32> to vector<32x16xf32>
    %cst_75 = arith.constant dense<0.000000e+00> : vector<28x16xf32>
    %102 = tpu.matmul %88, %101, %cst_75 {dimension_numbers = #tpu.dot_dimension_numbers<[1], [0], [0], [1], [0, 0, 1, 1], [], []>} : vector<28x32xf32>, vector<32x16xf32>, vector<28x16xf32> -> vector<28x16xf32>
    %103 = arith.addf %99, %102 : vector<28x16xf32>
    %c1_76 = arith.constant 1 : index
    %c2_77 = arith.constant 2 : index
    %c0_78 = arith.constant 0 : index
    %c0_79 = arith.constant 0 : index
    %104 = vector.load %arg9[%c1_76, %c2_77, %c0_78, %c0_79] : memref<4x3x32x16xf32, #tpu.memory_space<vmem>>, vector<1x1x32x16xf32>
    %105 = vector.shape_cast %104 : vector<1x1x32x16xf32> to vector<32x16xf32>
    %cst_80 = arith.constant dense<0.000000e+00> : vector<28x16xf32>
    %106 = tpu.matmul %96, %105, %cst_80 {dimension_numbers = #tpu.dot_dimension_numbers<[1], [0], [0], [1], [0, 0, 1, 1], [], []>} : vector<28x32xf32>, vector<32x16xf32>, vector<28x16xf32> -> vector<28x16xf32>
    %107 = arith.addf %103, %106 : vector<28x16xf32>
    %c1_81 = arith.constant 1 : index
    %c0_82 = arith.constant 0 : index
    %c0_83 = arith.constant 0 : index
    %108 = vector.load %arg10[%c1_81, %c0_82, %c0_83] : memref<4x1x16xf32, #tpu.memory_space<vmem>>, vector<1x1x16xf32>
    %109 = vector.shape_cast %108 : vector<1x1x16xf32> to vector<1x16xf32>
    %110 = vector.broadcast %109 : vector<1x16xf32> to vector<28x16xf32>
    %111 = arith.addf %107, %110 : vector<28x16xf32>
    %cst_84 = arith.constant 0.000000e+00 : f32
    %112 = vector.broadcast %cst_84 : f32 to vector<28x16xf32>
    %113 = arith.cmpf ogt, %111, %112 : vector<28x16xf32>
    %114 = math.exp %111 : vector<28x16xf32>
    %cst_85 = arith.constant 1.000000e+00 : f32
    %115 = vector.broadcast %cst_85 : f32 to vector<28x16xf32>
    %116 = arith.subf %114, %115 : vector<28x16xf32>
    %117 = arith.select %113, %111, %116 : vector<28x16xi1>, vector<28x16xf32>
    %c1_86 = arith.constant 1 : index
    %c0_87 = arith.constant 0 : index
    %c0_88 = arith.constant 0 : index
    %118 = vector.load %arg11[%c1_86, %c0_87, %c0_88] : memref<4x16x32xf32, #tpu.memory_space<vmem>>, vector<1x16x32xf32>
    %119 = vector.shape_cast %118 : vector<1x16x32xf32> to vector<16x32xf32>
    %cst_89 = arith.constant dense<0.000000e+00> : vector<28x32xf32>
    %120 = tpu.matmul %117, %119, %cst_89 {dimension_numbers = #tpu.dot_dimension_numbers<[1], [0], [0], [1], [0, 0, 1, 1], [], []>} : vector<28x16xf32>, vector<16x32xf32>, vector<28x32xf32> -> vector<28x32xf32>
    %c1_90 = arith.constant 1 : index
    %c0_91 = arith.constant 0 : index
    %c0_92 = arith.constant 0 : index
    %121 = vector.load %arg12[%c1_90, %c0_91, %c0_92] : memref<4x1x32xf32, #tpu.memory_space<vmem>>, vector<1x1x32xf32>
    %122 = vector.shape_cast %121 : vector<1x1x32xf32> to vector<1x32xf32>
    %123 = vector.broadcast %122 : vector<1x32xf32> to vector<28x32xf32>
    %124 = arith.addf %120, %123 : vector<28x32xf32>
    %125 = arith.addf %82, %124 : vector<28x32xf32>
    %c1_93 = arith.constant 1 : index
    %c1_94 = arith.constant 1 : index
    %c0_95 = arith.constant 0 : index
    %c0_96 = arith.constant 0 : index
    %126 = vector.load %arg3[%c1_93, %c1_94, %c0_95, %c0_96] : memref<2x2x32x32xf32, #tpu.memory_space<vmem>>, vector<1x1x32x32xf32>
    %127 = vector.shape_cast %126 : vector<1x1x32x32xf32> to vector<32x32xf32>
    %cst_97 = arith.constant dense<0.000000e+00> : vector<28x32xf32>
    %128 = tpu.matmul %125, %127, %cst_97 {dimension_numbers = #tpu.dot_dimension_numbers<[1], [0], [0], [1], [0, 0, 1, 1], [], []>} : vector<28x32xf32>, vector<32x32xf32>, vector<28x32xf32> -> vector<28x32xf32>
    %c1_98 = arith.constant 1 : index
    %c0_99 = arith.constant 0 : index
    %c0_100 = arith.constant 0 : index
    %c0_101 = arith.constant 0 : index
    %129 = vector.load %arg3[%c1_98, %c0_99, %c0_100, %c0_101] : memref<2x2x32x32xf32, #tpu.memory_space<vmem>>, vector<1x1x32x32xf32>
    %130 = vector.shape_cast %129 : vector<1x1x32x32xf32> to vector<32x32xf32>
    %cst_102 = arith.constant dense<0.000000e+00> : vector<28x32xf32>
    %131 = tpu.matmul %125, %130, %cst_102 {dimension_numbers = #tpu.dot_dimension_numbers<[1], [0], [0], [1], [0, 0, 1, 1], [], []>} : vector<28x32xf32>, vector<32x32xf32>, vector<28x32xf32> -> vector<28x32xf32>
    %c0_103 = arith.constant 0 : index
    %c0_104 = arith.constant 0 : index
    %c0_105 = arith.constant 0 : index
    %132 = vector.load %arg6[%c0_103, %c0_104, %c0_105] : memref<2x52x28xf32, #tpu.memory_space<vmem>>, vector<1x52x28xf32>
    %133 = vector.shape_cast %132 : vector<1x52x28xf32> to vector<52x28xf32>
    %cst_106 = arith.constant dense<0.000000e+00> : vector<52x32xf32>
    %134 = tpu.matmul %133, %128, %cst_106 {dimension_numbers = #tpu.dot_dimension_numbers<[1], [0], [0], [1], [0, 0, 1, 1], [], []>} : vector<52x28xf32>, vector<28x32xf32>, vector<52x32xf32> -> vector<52x32xf32>
    %c1_107 = arith.constant 1 : index
    %c0_108 = arith.constant 0 : index
    %c0_109 = arith.constant 0 : index
    %135 = vector.load %arg6[%c1_107, %c0_108, %c0_109] : memref<2x52x28xf32, #tpu.memory_space<vmem>>, vector<1x52x28xf32>
    %136 = vector.shape_cast %135 : vector<1x52x28xf32> to vector<52x28xf32>
    %cst_110 = arith.constant dense<0.000000e+00> : vector<52x32xf32>
    %137 = tpu.matmul %136, %131, %cst_110 {dimension_numbers = #tpu.dot_dimension_numbers<[1], [0], [0], [1], [0, 0, 1, 1], [], []>} : vector<52x28xf32>, vector<28x32xf32>, vector<52x32xf32> -> vector<52x32xf32>
    %138 = arith.addf %134, %137 : vector<52x32xf32>
    %c1_111 = arith.constant 1 : index
    %c0_112 = arith.constant 0 : index
    %c0_113 = arith.constant 0 : index
    %139 = vector.load %arg4[%c1_111, %c0_112, %c0_113] : memref<2x1x32xf32, #tpu.memory_space<vmem>>, vector<1x1x32xf32>
    %140 = vector.shape_cast %139 : vector<1x1x32xf32> to vector<1x32xf32>
    %141 = vector.broadcast %140 : vector<1x32xf32> to vector<52x32xf32>
    %142 = arith.addf %138, %141 : vector<52x32xf32>
    %cst_114 = arith.constant 0.000000e+00 : f32
    %143 = vector.broadcast %cst_114 : f32 to vector<52x32xf32>
    %144 = arith.cmpf ogt, %142, %143 : vector<52x32xf32>
    %145 = math.exp %142 : vector<52x32xf32>
    %cst_115 = arith.constant 1.000000e+00 : f32
    %146 = vector.broadcast %cst_115 : f32 to vector<52x32xf32>
    %147 = arith.subf %145, %146 : vector<52x32xf32>
    %148 = arith.select %144, %142, %147 : vector<52x32xi1>, vector<52x32xf32>
    %c0_116 = arith.constant 0 : index
    %c0_117 = arith.constant 0 : index
    %c0_118 = arith.constant 0 : index
    %149 = vector.load %arg8[%c0_116, %c0_117, %c0_118] : memref<2x52x1xf32, #tpu.memory_space<vmem>>, vector<1x52x1xf32>
    %150 = vector.shape_cast %149 : vector<1x52x1xf32> to vector<52x1xf32>
    %c1_119 = arith.constant 1 : index
    %c0_120 = arith.constant 0 : index
    %c0_121 = arith.constant 0 : index
    %151 = vector.load %arg8[%c1_119, %c0_120, %c0_121] : memref<2x52x1xf32, #tpu.memory_space<vmem>>, vector<1x52x1xf32>
    %152 = vector.shape_cast %151 : vector<1x52x1xf32> to vector<52x1xf32>
    %cst_122 = arith.constant 0.000000e+00 : f32
    %153 = vector.broadcast %cst_122 : f32 to vector<1x32xf32>
    %cst_123 = arith.constant 0.000000e+00 : f32
    %154 = vector.broadcast %cst_123 : f32 to vector<52x32xf32>
    %155 = arith.cmpf ogt, %148, %154 : vector<52x32xf32>
    %156 = math.exp %148 : vector<52x32xf32>
    %cst_124 = arith.constant 1.000000e+00 : f32
    %157 = vector.broadcast %cst_124 : f32 to vector<52x32xf32>
    %158 = arith.subf %156, %157 : vector<52x32xf32>
    %159 = arith.select %155, %148, %158 : vector<52x32xi1>, vector<52x32xf32>
    %160 = vector.extract_strided_slice %159 {offsets = [0, 0], sizes = [51, 32], strides = [1, 1]} : vector<52x32xf32> to vector<51x32xf32>
    %161 = tpu.concatenate %153, %160 in 0 : vector<1x32xf32>, vector<51x32xf32> -> vector<52x32xf32>
    %162 = vector.broadcast %150 : vector<52x1xf32> to vector<52x32xf32>
    %163 = arith.mulf %161, %162 : vector<52x32xf32>
    %164 = vector.extract_strided_slice %159 {offsets = [1, 0], sizes = [51, 32], strides = [1, 1]} : vector<52x32xf32> to vector<51x32xf32>
    %165 = tpu.concatenate %164, %153 in 0 : vector<51x32xf32>, vector<1x32xf32> -> vector<52x32xf32>
    %166 = vector.broadcast %152 : vector<52x1xf32> to vector<52x32xf32>
    %167 = arith.mulf %165, %166 : vector<52x32xf32>
    %c2_125 = arith.constant 2 : index
    %c0_126 = arith.constant 0 : index
    %c0_127 = arith.constant 0 : index
    %c0_128 = arith.constant 0 : index
    %168 = vector.load %arg9[%c2_125, %c0_126, %c0_127, %c0_128] : memref<4x3x32x16xf32, #tpu.memory_space<vmem>>, vector<1x1x32x16xf32>
    %169 = vector.shape_cast %168 : vector<1x1x32x16xf32> to vector<32x16xf32>
    %cst_129 = arith.constant dense<0.000000e+00> : vector<52x16xf32>
    %170 = tpu.matmul %163, %169, %cst_129 {dimension_numbers = #tpu.dot_dimension_numbers<[1], [0], [0], [1], [0, 0, 1, 1], [], []>} : vector<52x32xf32>, vector<32x16xf32>, vector<52x16xf32> -> vector<52x16xf32>
    %c2_130 = arith.constant 2 : index
    %c1_131 = arith.constant 1 : index
    %c0_132 = arith.constant 0 : index
    %c0_133 = arith.constant 0 : index
    %171 = vector.load %arg9[%c2_130, %c1_131, %c0_132, %c0_133] : memref<4x3x32x16xf32, #tpu.memory_space<vmem>>, vector<1x1x32x16xf32>
    %172 = vector.shape_cast %171 : vector<1x1x32x16xf32> to vector<32x16xf32>
    %cst_134 = arith.constant dense<0.000000e+00> : vector<52x16xf32>
    %173 = tpu.matmul %159, %172, %cst_134 {dimension_numbers = #tpu.dot_dimension_numbers<[1], [0], [0], [1], [0, 0, 1, 1], [], []>} : vector<52x32xf32>, vector<32x16xf32>, vector<52x16xf32> -> vector<52x16xf32>
    %174 = arith.addf %170, %173 : vector<52x16xf32>
    %c2_135 = arith.constant 2 : index
    %c2_136 = arith.constant 2 : index
    %c0_137 = arith.constant 0 : index
    %c0_138 = arith.constant 0 : index
    %175 = vector.load %arg9[%c2_135, %c2_136, %c0_137, %c0_138] : memref<4x3x32x16xf32, #tpu.memory_space<vmem>>, vector<1x1x32x16xf32>
    %176 = vector.shape_cast %175 : vector<1x1x32x16xf32> to vector<32x16xf32>
    %cst_139 = arith.constant dense<0.000000e+00> : vector<52x16xf32>
    %177 = tpu.matmul %167, %176, %cst_139 {dimension_numbers = #tpu.dot_dimension_numbers<[1], [0], [0], [1], [0, 0, 1, 1], [], []>} : vector<52x32xf32>, vector<32x16xf32>, vector<52x16xf32> -> vector<52x16xf32>
    %178 = arith.addf %174, %177 : vector<52x16xf32>
    %c2_140 = arith.constant 2 : index
    %c0_141 = arith.constant 0 : index
    %c0_142 = arith.constant 0 : index
    %179 = vector.load %arg10[%c2_140, %c0_141, %c0_142] : memref<4x1x16xf32, #tpu.memory_space<vmem>>, vector<1x1x16xf32>
    %180 = vector.shape_cast %179 : vector<1x1x16xf32> to vector<1x16xf32>
    %181 = vector.broadcast %180 : vector<1x16xf32> to vector<52x16xf32>
    %182 = arith.addf %178, %181 : vector<52x16xf32>
    %cst_143 = arith.constant 0.000000e+00 : f32
    %183 = vector.broadcast %cst_143 : f32 to vector<52x16xf32>
    %184 = arith.cmpf ogt, %182, %183 : vector<52x16xf32>
    %185 = math.exp %182 : vector<52x16xf32>
    %cst_144 = arith.constant 1.000000e+00 : f32
    %186 = vector.broadcast %cst_144 : f32 to vector<52x16xf32>
    %187 = arith.subf %185, %186 : vector<52x16xf32>
    %188 = arith.select %184, %182, %187 : vector<52x16xi1>, vector<52x16xf32>
    %c2_145 = arith.constant 2 : index
    %c0_146 = arith.constant 0 : index
    %c0_147 = arith.constant 0 : index
    %189 = vector.load %arg11[%c2_145, %c0_146, %c0_147] : memref<4x16x32xf32, #tpu.memory_space<vmem>>, vector<1x16x32xf32>
    %190 = vector.shape_cast %189 : vector<1x16x32xf32> to vector<16x32xf32>
    %cst_148 = arith.constant dense<0.000000e+00> : vector<52x32xf32>
    %191 = tpu.matmul %188, %190, %cst_148 {dimension_numbers = #tpu.dot_dimension_numbers<[1], [0], [0], [1], [0, 0, 1, 1], [], []>} : vector<52x16xf32>, vector<16x32xf32>, vector<52x32xf32> -> vector<52x32xf32>
    %c2_149 = arith.constant 2 : index
    %c0_150 = arith.constant 0 : index
    %c0_151 = arith.constant 0 : index
    %192 = vector.load %arg12[%c2_149, %c0_150, %c0_151] : memref<4x1x32xf32, #tpu.memory_space<vmem>>, vector<1x1x32xf32>
    %193 = vector.shape_cast %192 : vector<1x1x32xf32> to vector<1x32xf32>
    %194 = vector.broadcast %193 : vector<1x32xf32> to vector<52x32xf32>
    %195 = arith.addf %191, %194 : vector<52x32xf32>
    %196 = arith.addf %148, %195 : vector<52x32xf32>
    %cst_152 = arith.constant 0.000000e+00 : f32
    %197 = vector.broadcast %cst_152 : f32 to vector<52x32xf32>
    %198 = arith.cmpf ogt, %196, %197 : vector<52x32xf32>
    %199 = math.exp %196 : vector<52x32xf32>
    %cst_153 = arith.constant 1.000000e+00 : f32
    %200 = vector.broadcast %cst_153 : f32 to vector<52x32xf32>
    %201 = arith.subf %199, %200 : vector<52x32xf32>
    %202 = arith.select %198, %196, %201 : vector<52x32xi1>, vector<52x32xf32>
    %203 = vector.extract_strided_slice %202 {offsets = [0, 0], sizes = [51, 32], strides = [1, 1]} : vector<52x32xf32> to vector<51x32xf32>
    %204 = tpu.concatenate %153, %203 in 0 : vector<1x32xf32>, vector<51x32xf32> -> vector<52x32xf32>
    %205 = vector.broadcast %150 : vector<52x1xf32> to vector<52x32xf32>
    %206 = arith.mulf %204, %205 : vector<52x32xf32>
    %207 = vector.extract_strided_slice %202 {offsets = [1, 0], sizes = [51, 32], strides = [1, 1]} : vector<52x32xf32> to vector<51x32xf32>
    %208 = tpu.concatenate %207, %153 in 0 : vector<51x32xf32>, vector<1x32xf32> -> vector<52x32xf32>
    %209 = vector.broadcast %152 : vector<52x1xf32> to vector<52x32xf32>
    %210 = arith.mulf %208, %209 : vector<52x32xf32>
    %c3 = arith.constant 3 : index
    %c0_154 = arith.constant 0 : index
    %c0_155 = arith.constant 0 : index
    %c0_156 = arith.constant 0 : index
    %211 = vector.load %arg9[%c3, %c0_154, %c0_155, %c0_156] : memref<4x3x32x16xf32, #tpu.memory_space<vmem>>, vector<1x1x32x16xf32>
    %212 = vector.shape_cast %211 : vector<1x1x32x16xf32> to vector<32x16xf32>
    %cst_157 = arith.constant dense<0.000000e+00> : vector<52x16xf32>
    %213 = tpu.matmul %206, %212, %cst_157 {dimension_numbers = #tpu.dot_dimension_numbers<[1], [0], [0], [1], [0, 0, 1, 1], [], []>} : vector<52x32xf32>, vector<32x16xf32>, vector<52x16xf32> -> vector<52x16xf32>
    %c3_158 = arith.constant 3 : index
    %c1_159 = arith.constant 1 : index
    %c0_160 = arith.constant 0 : index
    %c0_161 = arith.constant 0 : index
    %214 = vector.load %arg9[%c3_158, %c1_159, %c0_160, %c0_161] : memref<4x3x32x16xf32, #tpu.memory_space<vmem>>, vector<1x1x32x16xf32>
    %215 = vector.shape_cast %214 : vector<1x1x32x16xf32> to vector<32x16xf32>
    %cst_162 = arith.constant dense<0.000000e+00> : vector<52x16xf32>
    %216 = tpu.matmul %202, %215, %cst_162 {dimension_numbers = #tpu.dot_dimension_numbers<[1], [0], [0], [1], [0, 0, 1, 1], [], []>} : vector<52x32xf32>, vector<32x16xf32>, vector<52x16xf32> -> vector<52x16xf32>
    %217 = arith.addf %213, %216 : vector<52x16xf32>
    %c3_163 = arith.constant 3 : index
    %c2_164 = arith.constant 2 : index
    %c0_165 = arith.constant 0 : index
    %c0_166 = arith.constant 0 : index
    %218 = vector.load %arg9[%c3_163, %c2_164, %c0_165, %c0_166] : memref<4x3x32x16xf32, #tpu.memory_space<vmem>>, vector<1x1x32x16xf32>
    %219 = vector.shape_cast %218 : vector<1x1x32x16xf32> to vector<32x16xf32>
    %cst_167 = arith.constant dense<0.000000e+00> : vector<52x16xf32>
    %220 = tpu.matmul %210, %219, %cst_167 {dimension_numbers = #tpu.dot_dimension_numbers<[1], [0], [0], [1], [0, 0, 1, 1], [], []>} : vector<52x32xf32>, vector<32x16xf32>, vector<52x16xf32> -> vector<52x16xf32>
    %221 = arith.addf %217, %220 : vector<52x16xf32>
    %c3_168 = arith.constant 3 : index
    %c0_169 = arith.constant 0 : index
    %c0_170 = arith.constant 0 : index
    %222 = vector.load %arg10[%c3_168, %c0_169, %c0_170] : memref<4x1x16xf32, #tpu.memory_space<vmem>>, vector<1x1x16xf32>
    %223 = vector.shape_cast %222 : vector<1x1x16xf32> to vector<1x16xf32>
    %224 = vector.broadcast %223 : vector<1x16xf32> to vector<52x16xf32>
    %225 = arith.addf %221, %224 : vector<52x16xf32>
    %cst_171 = arith.constant 0.000000e+00 : f32
    %226 = vector.broadcast %cst_171 : f32 to vector<52x16xf32>
    %227 = arith.cmpf ogt, %225, %226 : vector<52x16xf32>
    %228 = math.exp %225 : vector<52x16xf32>
    %cst_172 = arith.constant 1.000000e+00 : f32
    %229 = vector.broadcast %cst_172 : f32 to vector<52x16xf32>
    %230 = arith.subf %228, %229 : vector<52x16xf32>
    %231 = arith.select %227, %225, %230 : vector<52x16xi1>, vector<52x16xf32>
    %c3_173 = arith.constant 3 : index
    %c0_174 = arith.constant 0 : index
    %c0_175 = arith.constant 0 : index
    %232 = vector.load %arg11[%c3_173, %c0_174, %c0_175] : memref<4x16x32xf32, #tpu.memory_space<vmem>>, vector<1x16x32xf32>
    %233 = vector.shape_cast %232 : vector<1x16x32xf32> to vector<16x32xf32>
    %cst_176 = arith.constant dense<0.000000e+00> : vector<52x32xf32>
    %234 = tpu.matmul %231, %233, %cst_176 {dimension_numbers = #tpu.dot_dimension_numbers<[1], [0], [0], [1], [0, 0, 1, 1], [], []>} : vector<52x16xf32>, vector<16x32xf32>, vector<52x32xf32> -> vector<52x32xf32>
    %c3_177 = arith.constant 3 : index
    %c0_178 = arith.constant 0 : index
    %c0_179 = arith.constant 0 : index
    %235 = vector.load %arg12[%c3_177, %c0_178, %c0_179] : memref<4x1x32xf32, #tpu.memory_space<vmem>>, vector<1x1x32xf32>
    %236 = vector.shape_cast %235 : vector<1x1x32xf32> to vector<1x32xf32>
    %237 = vector.broadcast %236 : vector<1x32xf32> to vector<52x32xf32>
    %238 = arith.addf %234, %237 : vector<52x32xf32>
    %239 = arith.addf %196, %238 : vector<52x32xf32>
    %c0_180 = arith.constant 0 : index
    %c0_181 = arith.constant 0 : index
    %240 = vector.load %arg13[%c0_180, %c0_181] : memref<32x128xf32, #tpu.memory_space<vmem>>, vector<32x128xf32>
    %cst_182 = arith.constant dense<0.000000e+00> : vector<52x128xf32>
    %241 = tpu.matmul %239, %240, %cst_182 {dimension_numbers = #tpu.dot_dimension_numbers<[1], [0], [0], [1], [0, 0, 1, 1], [], []>} : vector<52x32xf32>, vector<32x128xf32>, vector<52x128xf32> -> vector<52x128xf32>
    %c0_183 = arith.constant 0 : index
    %c0_184 = arith.constant 0 : index
    %242 = vector.load %arg14[%c0_183, %c0_184] : memref<1x128xf32, #tpu.memory_space<vmem>>, vector<1x128xf32>
    %243 = vector.broadcast %242 : vector<1x128xf32> to vector<52x128xf32>
    %244 = arith.addf %241, %243 : vector<52x128xf32>
    %c0_185 = arith.constant 0 : index
    %c0_186 = arith.constant 0 : index
    %245 = vector.load %arg15[%c0_185, %c0_186] : memref<52x128xf32, #tpu.memory_space<vmem>>, vector<52x128xf32>
    tpu.vector_store %arg15[%c0_185, %c0_186], %244 {strides = array<i32>} : memref<52x128xf32, #tpu.memory_space<vmem>>, vector<52x128xf32>,
    return
  }
}

</mosaic_0001>

<bundles_post_ra>
// kernel: tpu_custom_call.1
= control target key start
LH: loop header
LB: loop body
LE: loop exit
PB: predicated region body
PF: predicated region fallthrough
CT: control target
= control target key end

     0   :  { %vm61_vm0 = vcmask 64512   ;;  %s5978_s0 = inlined_call_operand.vmem [shape: f32[16,8], index: 0, kind: input, shape index: {}]   ;;  %s5979_s1 = inlined_call_operand.vmem [shape: f32[8,32], index: 1, kind: input, shape index: {}]   ;;  %s5980_s2 = inlined_call_operand.vmem [shape: f32[1,32], index: 2, kind: input, shape index: {}]   ;;  %s5981_s3 = inlined_call_operand.vmem [shape: f32[2,2,32,32], index: 3, kind: input, shape index: {}]   ;;  %s5982_s4 = inlined_call_operand.vmem [shape: f32[2,1,32], index: 4, kind: input, shape index: {}]   ;;  %s5983_s5 = inlined_call_operand.vmem [shape: f32[2,28,16], index: 5, kind: input, shape index: {}]   ;;  %s5984_s6 = inlined_call_operand.vmem [shape: f32[2,52,28], index: 6, kind: input, shape index: {}]   ;;  %s5985_s7 = inlined_call_operand.vmem [shape: f32[2,28,1], index: 7, kind: input, shape index: {}]   ;;  %s5986_s8 = inlined_call_operand.vmem [shape: f32[2,52,1], index: 8, kind: input, shape index: {}]   ;;  %s5987_s9 = inlined_call_operand.vmem [shape: f32[4,3,32,16], index: 9, kind: input, shape index: {}]   ;;  %s5988_s10 = inlined_call_operand.vmem [shape: f32[4,1,16], index: 10, kind: input, shape index: {}]   ;;  %s5989_s11 = inlined_call_operand.vmem [shape: f32[4,16,32], index: 11, kind: input, shape index: {}]   ;;  %s5990_s12 = inlined_call_operand.vmem [shape: f32[4,1,32], index: 12, kind: input, shape index: {}]   ;;  %s5991_s13 = inlined_call_operand.vmem [shape: f32[32,128], index: 13, kind: input, shape index: {}]   ;;  %s5992_s14 = inlined_call_operand.vmem [shape: f32[1,128], index: 14, kind: input, shape index: {}]   ;;  %s5993_s15 = inlined_call_operand.hbm [shape: f32[52,128], index: 15, kind: output, shape index: {}]  }
   0x1   :  { %v53_v0 = vld [vmem:[%s5979_s1] sm:$0xff]  ;;  %v52_v2 = vld [vmem:[%s5978_s0 + $0x8] sm:$0xff] }
   0x2   :  { %v51_v1 = vld [vmem:[%s5978_s0] sm:$0xff]  ;;  %4204 = vmatprep.subr.mxu0 %v53_v0 }
   0x3   :  { %4206 = vmatprep.mubr.msk.f32.mxu0 %vm61_vm0, %v51_v1 }
   0x4   :  { %20 = vsyncpa [#allocation3], 0  ;;  %4205 = vmatpush3.msra.mxu0 %v53_v0  ;;  %v3699_v3 = vld [vmem:[%s5981_s3 + $0x38] sm:$0xff]  ;;  %v3698_v5 = vld [vmem:[%s5981_s3 + $0x30] sm:$0xff]  ;;  %vm158_vm1 = vcmask 261120   ;;  %vm328_vm4 = vcmask 130048  }
   0x5   :  { %4207 = vmatmul.mubr.msk.f32.vlgmr.msra.gmra.mxu0 %vm61_vm0, %v52_v2  ;;  %v243_v4 = vld [vmem:[%s5981_s3 + $0x18] sm:$0xff]  ;;  %4209 = vmatprep.subr.mxu1 %v3699_v3  ;;  %v242_v6 = vld [vmem:[%s5981_s3 + $0x10] sm:$0xff]  ;;  %v3697_v7 = vld [vmem:[%s5981_s3 + $0x28] sm:$0xff]  ;;  %v4846_v28 = vmov 0   ;;  %vm624_vm11 = vcmask 1046528   ;;  %vm587_vm13 = vcmask 1040384  }
   0x6   :  { %4220 = vmatprep.subr.mxu0 %v243_v4  ;;  %4210 = vmatpush3.msra.mxu1 %v3699_v3  ;;  %v241_v8 = vld [vmem:[%s5981_s3 + $0x8] sm:$0xff]  ;;  %v3696_v9 = vld [vmem:[%s5981_s3 + $0x20] sm:$0xff]  ;;  %v556_v31 = vld [vmem:[%s5985_s7 + $0x10] sm:$0xff]  ;;  %vm636_vm15 = vcmask 1042432  }
   0x7   :  { %4221 = vmatpush3.msra.mxu0 %v243_v4  ;;  %4211 = vmatprep.subr.mxu1 %v3698_v5  ;;  %v240_v10 = vld [vmem:[%s5981_s3] sm:$0xff]  ;;  %v555_v29 = vld [vmem:[%s5985_s7 + $0x8] sm:$0xff]  ;;  %v557_v32 = vld [vmem:[%s5985_s7 + $0x18] sm:$0xf] }
   0x8   :  { %4222 = vmatprep.subr.mxu0 %v242_v6  ;;  %4212 = vmatpush3.msra.mxu1 %v3698_v5  ;;  %v3691_v11 = vld [vmem:[%s5980_s2] ss:$0 sm:$0xff]  ;;  %v3722_v30 = vld [vmem:[%s5985_s7 + $0x28] sm:$0xff]  ;;  %v3723_v33 = vld [vmem:[%s5985_s7 + $0x30] sm:$0xff] }
   0x9   :  { %4223 = vmatpush3.msra.mxu0 %v242_v6  ;;  %4213 = vmatprep.subr.mxu1 %v3697_v7  ;;  %v3704_v24 = vld [vmem:[%s5983_s5 + $0x20] sm:$0xff]  ;;  %v3724_v34 = vld [vmem:[%s5985_s7 + $0x38] sm:$0xf]  ;;  %v2122_v37 = vld [vmem:[%s5986_s8 + $0x8] sm:$0xff] }
   0xa   :  { %4224 = vmatprep.subr.mxu0 %v241_v8  ;;  %4214 = vmatpush3.msra.mxu1 %v3697_v7  ;;  %v319_v25 = vld [vmem:[%s5983_s5] sm:$0xff]  ;;  %v3849_v36 = vld [vmem:[%s5986_s8 + $0x38] sm:$0xff]  ;;  %v2123_v39 = vld [vmem:[%s5986_s8 + $0x10] sm:$0xff] }
   0xb   :  { %4225 = vmatpush3.msra.mxu0 %v241_v8  ;;  %4215 = vmatprep.subr.mxu1 %v3696_v9  ;;  %v554_v26 = vld [vmem:[%s5985_s7] sm:$0xff]  ;;  %v3851_v40 = vld [vmem:[%s5986_s8 + $0x48] sm:$0xff]  ;;  %v2124_v41 = vld [vmem:[%s5986_s8 + $0x18] sm:$0xff] }
   0xc   :  { %4226 = vmatprep.subr.mxu0 %v240_v10  ;;  %4216 = vmatpush3.msra.mxu1 %v3696_v9  ;;  %v3721_v27 = vld [vmem:[%s5985_s7 + $0x20] sm:$0xff]  ;;  %v3852_v42 = vld [vmem:[%s5986_s8 + $0x50] sm:$0xff]  ;;  %v3853_v44 = vld [vmem:[%s5986_s8 + $0x58] sm:$0xff] }
   0xd   :  { %4227 = vmatpush3.msra.mxu0 %v240_v10  ;;  %4708 = vset.pattern.permute.xlu0 %v4846_v28  ;;  %v2121_v35 = vld [vmem:[%s5986_s8] sm:$0xff]  ;;  %v2126_v45 = vld [vmem:[%s5986_s8 + $0x28] sm:$0xff]  ;;  %v2127_v47 = vld [vmem:[%s5986_s8 + $0x30] sm:$0xf] }
   0xe   :  { %4709 = vset.pattern.permute.xlu1 %v4846_v28  ;;  %602 = vperm.xlu0 %4708, %v554_v26   ;;  %v3850_v38 = vld [vmem:[%s5986_s8 + $0x40] sm:$0xff]  ;;  %v3855_v48 = vld [vmem:[%s5986_s8 + $0x68] sm:$0xf]  ;;  %v3706_v55 = vld [vmem:[%s5983_s5 + $0x30] sm:$0xff] }
   0xf   :  { %640 = vperm.xlu1 %4709, %v3721_v27   ;;  %v2125_v43 = vld [vmem:[%s5986_s8 + $0x20] sm:$0xff]  ;;  %v3705_v53 = vld [vmem:[%s5983_s5 + $0x28] sm:$0xff]  ;;  %v321_v56 = vld [vmem:[%s5983_s5 + $0x10] sm:$0xff] }
  0x10   :  { %v3854_v46 = vld [vmem:[%s5986_s8 + $0x60] sm:$0xff]  ;;  %v320_v54 = vld [vmem:[%s5983_s5 + $0x8] sm:$0xff]  ;;  %v3707_v57 = vld [vmem:[%s5983_s5 + $0x38] sm:$0xf] }
  0x11   :  { %v322_v58 = vld [vmem:[%s5983_s5 + $0x18] sm:$0xf]  ;;  %v3731_v60 = vld [vmem:[%s5987_s9 + $0x30] sm:$0xff]  ;;  %v3730_v61 = vld [vmem:[%s5987_s9 + $0x28] sm:$0xff] }
  0x12   :  { %607 = vperm.xlu0 %4708, %v555_v29   ;;  %v3732_v59 = vld [vmem:[%s5987_s9 + $0x38] sm:$0xff]  ;;  %v3729_v63 = vld [vmem:[%s5987_s9 + $0x20] sm:$0xff]  ;;  %v664_v0 = vld [vmem:[%s5987_s9 + $0x10] sm:$0xff] }
  0x13   :  { %645 = vperm.xlu1 %4709, %v3722_v30   ;;  %v665_v62 = vld [vmem:[%s5987_s9 + $0x18] sm:$0xff]  ;;  %v663_v2 = vld [vmem:[%s5987_s9 + $0x8] sm:$0xff]  ;;  %v662_v3 = vld [vmem:[%s5987_s9] sm:$0xff] }
  0x14   :  { %v5091_v1 = vld [vmem:[%s5987_s9 + $0x58] sm:$0xff]  ;;  %v3716_v6 = vld [vmem:[%s5982_s4] ss:$0 sm:$0xff] }
  0x16   :  { %612 = vperm.xlu0 %4708, %v556_v31  }
  0x17   :  { %617 = vperm.xlu1 %4709, %v557_v32  }
  0x1a   :  { %650 = vperm.xlu0 %4708, %v3723_v33  }
  0x1b   :  { %655 = vperm.xlu1 %4709, %v3724_v34  }
  0x1e   :  { %2201 = vperm.xlu0 %4708, %v2121_v35  }
  0x1f   :  { %2264 = vperm.xlu1 %4709, %v3849_v36  }
  0x22   :  { %2206 = vperm.xlu0 %4708, %v2122_v37  }
  0x23   :  { %2269 = vperm.xlu1 %4709, %v3850_v38  }
  0x26   :  { %2211 = vperm.xlu0 %4708, %v2123_v39  }
  0x27   :  { %2274 = vperm.xlu1 %4709, %v3851_v40  }
  0x2a   :  { %2216 = vperm.xlu0 %4708, %v2124_v41  }
  0x2b   :  { %2279 = vperm.xlu1 %4709, %v3852_v42  }
  0x2e   :  { %2221 = vperm.xlu0 %4708, %v2125_v43  }
  0x2f   :  { %2284 = vperm.xlu1 %4709, %v3853_v44  }
  0x32   :  { %2226 = vperm.xlu0 %4708, %v2126_v45  }
  0x33   :  { %2289 = vperm.xlu1 %4709, %v3854_v46  }
  0x36   :  { %2231 = vperm.xlu0 %4708, %v2127_v47  }
  0x37   :  { %2294 = vperm.xlu1 %4709, %v3855_v48  }
  0x89   :  { %v5115_v41 = vpop.permute.xlu0 %602 }
  0x8a   :  { %v5117_v43 = vpop.permute.xlu1 %640 }
  0x8d   :  { %v5119_v45 = vpop.permute.xlu0 %607 }
  0xc5   :  { %v4208_v12 = vpop.f32.mrf.mxu0 }
  0xc6   :  { %v140_v13 = vadd.f32 %v4208_v12, %v3691_v11 }
  0xc7   :  { %v134_v14 = vpop.f32.mrf.mxu0 }
  0xc8   :  { %v147_v15 = vmul.f32 1.442695, %v140_v13  ;;  %v135_v16 = vadd.f32 %v3691_v11, %v134_v14  ;;  %vm144_vm3 = vcmp.gt.f32.partialorder %v140_v13, 0.0 }
  0xca   :  { %4710 = vpow2.f32 %v147_v15  ;;  %v145_v17 = vmul.f32 1.442695, %v135_v16  ;;  %vm143_vm2 = vcmp.gt.f32.partialorder %v135_v16, 0.0 }
  0xcc   :  { %4712 = vpow2.f32 %v145_v17 }
  0xd7   :  { %v4711_v18 = vpop.eup %4710 }
  0xd8   :  { %v3695_v20 = vadd.f32 -1.0, %v4711_v18 }
  0xd9   :  { %v4713_v19 = vpop.eup %4712 }
  0xda   :  { %v3694_v21 = vadd.f32 -1.0, %v4713_v19  ;;  %v152_v23 = vsel %vm144_vm3, %v140_v13, %v3695_v20 }
  0xdc   :  { %v151_v22 = vsel %vm143_vm2, %v135_v16, %v3694_v21 }
  0xdd   :  { %4217 = vmatprep.mubr.msk.f32.mxu1 %vm158_vm1, %v151_v22  ;;  %4228 = vmatprep.mubr.msk.f32.mxu0 %vm158_vm1, %v151_v22 }
  0xde   :  { %4218 = vmatmul.mubr.msk.f32.vlgmr.msra.gmra.mxu1 %vm158_vm1, %v152_v23  ;;  %4229 = vmatmul.mubr.msk.f32.vlgmr.msra.gmra.mxu0 %vm158_vm1, %v152_v23 }
  0xdf   :  { %4235 = vmatprep.mubr.msk.f32.mxu1 %vm328_vm4, %v3704_v24  ;;  %4245 = vmatprep.mubr.msk.f32.mxu0 %vm328_vm4, %v319_v25 }
 0x19e   :  { %v4219_v49 = vpop.f32.mrf.mxu1  ;;  %v4230_v50 = vpop.f32.mrf.mxu0 }
 0x19f   :  { %4231 = vmatprep.subr.mxu1 %v4230_v50  ;;  %4241 = vmatprep.subr.mxu0 %v4219_v49 }
 0x1a0   :  { %v231_v51 = vpop.f32.mrf.mxu1  ;;  %v310_v52 = vpop.f32.mrf.mxu0  ;;  %4232 = vmatpush3.msra.mxu1 %v4230_v50  ;;  %4242 = vmatpush3.msra.mxu0 %v4219_v49 }
 0x1a1   :  { %4233 = vmatprep.subr.mxu1 %v310_v52  ;;  %4243 = vmatprep.subr.mxu0 %v231_v51 }
 0x1a2   :  { %4234 = vmatpush3.msra.mxu1 %v310_v52  ;;  %4244 = vmatpush3.msra.mxu0 %v231_v51 }
 0x1a3   :  { %4236 = vmatmul.mubr.msk.f32.vlgmr.msra.gmra.mxu1 %vm328_vm4, %v3705_v53  ;;  %4246 = vmatmul.mubr.msk.f32.vlgmr.msra.gmra.mxu0 %vm328_vm4, %v320_v54 }
 0x1a4   :  { %4238 = vmatprep.mubr.msk.f32.mxu1 %vm328_vm4, %v3706_v55  ;;  %4248 = vmatprep.mubr.msk.f32.mxu0 %vm328_vm4, %v321_v56  ;;  %v5126_v56 = vpop.permute.xlu1 %645 }
 0x1a5   :  { %4251 = vmatprep.subr.mxu1 %v3732_v59  ;;  %4265 = vmatprep.subr.mxu0 %v665_v62 }
 0x1a6   :  { %4252 = vmatpush3.msra.mxu1 %v3732_v59  ;;  %4266 = vmatpush3.msra.mxu0 %v665_v62  ;;  %v5132_v59 = vpop.permute.xlu0 %612 }
 0x1a7   :  { %4239 = vmatmul.mubr.msk.f32.gmra.mxu1 %vm328_vm4, %v3707_v57  ;;  %4249 = vmatmul.mubr.msk.f32.gmra.mxu0 %vm328_vm4, %v322_v58  ;;  %v3743_v57 = vld [vmem:[%s5987_s9 + $0x50] sm:$0xff] }
 0x1a8   :  { %4253 = vmatprep.subr.mxu1 %v3731_v60  ;;  %4267 = vmatprep.subr.mxu0 %v664_v0 }
 0x1a9   :  { %4254 = vmatpush3.msra.mxu1 %v3731_v60  ;;  %4268 = vmatpush3.msra.mxu0 %v664_v0  ;;  %v3742_v0 = vld [vmem:[%s5987_s9 + $0x48] sm:$0xff] }
 0x1aa   :  { %4255 = vmatprep.subr.mxu1 %v3730_v61  ;;  %4269 = vmatprep.subr.mxu0 %v663_v2 }
 0x1ab   :  { %4256 = vmatpush3.msra.mxu1 %v3730_v61  ;;  %4270 = vmatpush3.msra.mxu0 %v663_v2 }
 0x1ac   :  { %4257 = vmatprep.subr.mxu1 %v3729_v63  ;;  %4271 = vmatprep.subr.mxu0 %v662_v3 }
 0x1ad   :  { %4258 = vmatpush3.msra.mxu1 %v3729_v63  ;;  %4272 = vmatpush3.msra.mxu0 %v662_v3 }
 0x1ae   :  { %4279 = vmatprep.subr.mxu1 %v5091_v1 }
 0x263   :  { %v4237_v4 = vpop.f32.mrf.mxu1  ;;  %v4247_v5 = vpop.f32.mrf.mxu0 }
 0x264   :  { %v510_v7 = vadd.f32 %v4247_v5, %v4237_v4 }
 0x265   :  { %v407_v8 = vpop.f32.mrf.mxu1  ;;  %v504_v9 = vpop.f32.mrf.mxu0 }
 0x266   :  { %v531_v10 = vadd.f32 %v3716_v6, %v510_v7  ;;  %v505_v11 = vadd.f32 %v504_v9, %v407_v8 }
 0x267   :  { %v4240_v12 = vpop.f32.mrf.mxu1  ;;  %v4250_v13 = vpop.f32.mrf.mxu0 }
 0x268   :  { %v540_v14 = vmul.f32 1.442695, %v531_v10  ;;  %v530_v15 = vadd.f32 %v3716_v6, %v505_v11  ;;  %v520_v16 = vadd.f32 %v4250_v13, %v4240_v12  ;;  %vm535_vm5 = vcmp.gt.f32.partialorder %v531_v10, 0.0  ;;  %v3741_v11 = vld [vmem:[%s5987_s9 + $0x40] sm:$0xff] }
 0x269   :  { %v417_v17 = vpop.f32.mrf.mxu1  ;;  %v514_v18 = vpop.f32.mrf.mxu0 }
 0x26a   :  { %4714 = vpow2.f32 %v540_v14  ;;  %v538_v19 = vmul.f32 1.442695, %v530_v15  ;;  %v533_v20 = vadd.f32 %v3716_v6, %v520_v16  ;;  %v515_v21 = vadd.f32 %v514_v18, %v417_v17 }
 0x26b   :  { %vm534_vm6 = vcmp.gt.f32.partialorder %v530_v15, 0.0 }
 0x26c   :  { %4716 = vpow2.f32 %v538_v19  ;;  %v544_v22 = vmul.f32 1.442695, %v533_v20  ;;  %v532_v23 = vadd.f32 %v3716_v6, %v515_v21  ;;  %vm537_vm7 = vcmp.gt.f32.partialorder %v533_v20, 0.0 }
 0x26e   :  { %4718 = vpow2.f32 %v544_v22  ;;  %v542_v24 = vmul.f32 1.442695, %v532_v23  ;;  %vm536_vm8 = vcmp.gt.f32.partialorder %v532_v23, 0.0 }
 0x270   :  { %4720 = vpow2.f32 %v542_v24  ;;  %v999_v24 = vld [vmem:[%s5989_s11 + $0x8] sm:$0xff] }
 0x271   :  { %4293 = vmatprep.subr.mxu0 %v999_v24 }
 0x277   :  { %v4715_v25 = vpop.eup %4714 }
 0x278   :  { %v3718_v26 = vadd.f32 -1.0, %v4715_v25  ;;  %v998_v25 = vld [vmem:[%s5989_s11] sm:$0xff] }
 0x279   :  { %v4717_v27 = vpop.eup %4716 }
 0x27a   :  { %v5103_v28 = vsel %vm535_vm5, %v531_v10, %v3718_v26  ;;  %v3717_v29 = vadd.f32 -1.0, %v4717_v27  ;;  %v5149_v10 = vpop.permute.xlu1 %617 }
 0x27b   :  { %v4719_v30 = vpop.eup %4718  ;;  %v569_v31 = vmul.f32 1.442695, %v5103_v28  ;;  %vm564_vm9 = vcmp.gt.f32.partialorder %v5103_v28, 0.0 }
 0x27c   :  { %v5106_v32 = vsel %vm534_vm6, %v530_v15, %v3717_v29  ;;  %v3720_v33 = vadd.f32 -1.0, %v4719_v30  ;;  %v5159_v15 = vpop.permute.xlu0 %650 }
 0x27d   :  { %4722 = vpow2.f32 %v569_v31  ;;  %v567_v34 = vmul.f32 1.442695, %v5106_v32  ;;  %v4721_v35 = vpop.eup %4720  ;;  %vm563_vm10 = vcmp.gt.f32.partialorder %v5106_v32, 0.0 }
 0x27e   :  { %v5109_v36 = vsel %vm537_vm7, %v533_v20, %v3720_v33  ;;  %v3719_v38 = vadd.f32 -1.0, %v4721_v35  ;;  %v5172_v22 = vpop.permute.xlu1 %655 }
 0x27f   :  { %4724 = vpow2.f32 %v567_v34  ;;  %v573_v37 = vmul.f32 1.442695, %v5109_v36  ;;  %vm566_vm12 = vcmp.gt.f32.partialorder %v5109_v36, 0.0 }
 0x280   :  { %v5112_v39 = vsel %vm536_vm8, %v532_v23, %v3719_v38  ;;  %v3749_v38 = vld [vmem:[%s5988_s10] ss:$0 sm:$0xff] }
 0x281   :  { %4726 = vpow2.f32 %v573_v37  ;;  %v571_v40 = vmul.f32 1.442695, %v5112_v39  ;;  %vm565_vm14 = vcmp.gt.f32.partialorder %v5112_v39, 0.0 }
 0x283   :  { %4728 = vpow2.f32 %v571_v40 }
 0x28a   :  { %v4723_v42 = vpop.eup %4722 }
 0x28b   :  { %v3726_v44 = vadd.f32 -1.0, %v4723_v42 }
 0x28c   :  { %v4725_v46 = vpop.eup %4724 }
 0x28d   :  { %v3725_v47 = vadd.f32 -1.0, %v4725_v46  ;;  %v580_v48 = vsel %vm564_vm9, %v5103_v28, %v3726_v44 }
 0x28e   :  { %v4727_v49 = vpop.eup %4726  ;;  %v626_v53 = vrot.slane %v580_v48, 1  ;;  %v589_v55 = vrot.slane %v580_v48, 7 }
 0x28f   :  { %v579_v50 = vsel %vm563_vm10, %v5106_v32, %v3725_v47  ;;  %v3728_v51 = vadd.f32 -1.0, %v4727_v49 }
 0x290   :  { %v625_v52 = vrot.slane %v579_v50, 1  ;;  %v588_v54 = vrot.slane %v579_v50, 7  ;;  %4259 = vmatprep.mubr.msk.f32.mxu1 %vm158_vm1, %v579_v50  ;;  %v4729_v58 = vpop.eup %4728 }
 0x291   :  { %v582_v60 = vsel %vm566_vm12, %v5109_v36, %v3728_v51  ;;  %4260 = vmatmul.mubr.msk.f32.vlgmr.msra.gmra.mxu1 %vm158_vm1, %v580_v48  ;;  %v3727_v63 = vadd.f32 -1.0, %v4729_v58 }
 0x292   :  { %v627_v61 = vsel %vm624_vm11, %v625_v52, %v626_v53  ;;  %v590_v62 = vsel %vm587_vm13, %v588_v54, %v589_v55  ;;  %4280 = vmatpush3.msra.mxu1 %v5091_v1  ;;  %v599_v3 = vsel %vm587_vm13, 0.0, %v588_v54  ;;  %v593_v5 = vrot.slane %v582_v60, 7 }
 0x293   :  { %v621_v2 = vmul.f32 %v5119_v45, %v590_v62  ;;  %4281 = vmatprep.subr.mxu1 %v3743_v57  ;;  %v581_v4 = vsel %vm565_vm14, %v5112_v39, %v3727_v63  ;;  %v620_v6 = vmul.f32 %v5115_v41, %v599_v3  ;;  %v658_v7 = vmul.f32 %v5117_v43, %v627_v61 }
 0x294   :  { %4282 = vmatpush3.msra.mxu1 %v3743_v57  ;;  %v628_v1 = vrot.slane %v581_v4, 1  ;;  %v591_v8 = vrot.slane %v581_v4, 7  ;;  %v630_v9 = vrot.slane %v582_v60, 1  ;;  %4262 = vmatprep.mubr.msk.f32.mxu1 %vm158_vm1, %v581_v4 }
 0x295   :  { %4283 = vmatprep.subr.mxu1 %v3742_v0  ;;  %4263 = vmatmul.mubr.msk.f32.gmra.mxu1 %vm158_vm1, %v582_v60 }
 0x296   :  { %4273 = vmatprep.mubr.msk.f32.mxu0 %vm158_vm1, %v620_v6  ;;  %v629_v12 = vsel %vm624_vm11, %v626_v53, %v628_v1  ;;  %v592_v13 = vsel %vm587_vm13, %v589_v55, %v591_v8  ;;  %v594_v14 = vsel %vm587_vm13, %v591_v8, %v593_v5  ;;  %v631_v16 = vsel %vm624_vm11, %v628_v1, %v630_v9 }
 0x297   :  { %4274 = vmatmul.mubr.msk.f32.vlgmr.msra.gmra.mxu0 %vm158_vm1, %v621_v2  ;;  %v659_v17 = vmul.f32 %v5126_v56, %v629_v12  ;;  %v622_v18 = vmul.f32 %v5132_v59, %v592_v13  ;;  %v623_v19 = vmul.f32 %v5149_v10, %v594_v14  ;;  %v660_v20 = vmul.f32 %v5159_v15, %v631_v16  ;;  %v3770_v13 = vld [vmem:[%s5987_s9 + $0x98] sm:$0xff]  ;;  %v3769_v14 = vld [vmem:[%s5987_s9 + $0x90] sm:$0xff] }
 0x298   :  { %4284 = vmatpush3.msra.mxu1 %v3742_v0  ;;  %4287 = vmatprep.mubr.msk.f32.mxu1 %vm158_vm1, %v658_v7  ;;  %v637_v21 = vsel %vm636_vm15, %v630_v9, 0.0  ;;  %v3766_v16 = vld [vmem:[%s5987_s9 + $0x78] sm:$0xff] }
 0x299   :  { %4285 = vmatprep.subr.mxu1 %v3741_v11  ;;  %4276 = vmatprep.mubr.msk.f32.mxu0 %vm158_vm1, %v622_v18  ;;  %v661_v23 = vmul.f32 %v5172_v22, %v637_v21  ;;  %v3767_v18 = vld [vmem:[%s5987_s9 + $0x80] sm:$0xff]  ;;  %v3764_v21 = vld [vmem:[%s5987_s9 + $0x68] sm:$0xff] }
 0x29a   :  { %4286 = vmatpush3.msra.mxu1 %v3741_v11  ;;  %4294 = vmatpush3.msra.mxu0 %v999_v24  ;;  %v3754_v24 = vld [vmem:[%s5990_s12] ss:$0 sm:$0xff] }
 0x29b   :  { %4288 = vmatmul.mubr.msk.f32.vlgmr.msra.gmra.mxu1 %vm158_vm1, %v659_v17  ;;  %4277 = vmatmul.mubr.msk.f32.gmra.mxu0 %vm158_vm1, %v623_v19  ;;  %v3768_v17 = vld [vmem:[%s5987_s9 + $0x88] sm:$0xff]  ;;  %v3765_v19 = vld [vmem:[%s5987_s9 + $0x70] sm:$0xff] }
 0x29c   :  { %4290 = vmatprep.mubr.msk.f32.mxu1 %vm158_vm1, %v660_v20  ;;  %4295 = vmatprep.subr.mxu0 %v998_v25  ;;  %v3782_v20 = vld [vmem:[%s5987_s9 + $0xb8] sm:$0xff] }
 0x29d   :  { %4296 = vmatpush3.msra.mxu0 %v998_v25  ;;  %4303 = vmatprep.subr.mxu1 %v3770_v13 }
 0x29e   :  { %4304 = vmatpush3.msra.mxu1 %v3770_v13  ;;  %4317 = vmatprep.subr.mxu0 %v3766_v16 }
 0x29f   :  { %4291 = vmatmul.mubr.msk.f32.gmra.mxu1 %vm158_vm1, %v661_v23  ;;  %4305 = vmatprep.subr.mxu1 %v3769_v14  ;;  %v3763_v23 = vld [vmem:[%s5987_s9 + $0x60] sm:$0xff] }
 0x2a0   :  { %4306 = vmatpush3.msra.mxu1 %v3769_v14 }
 0x2a1   :  { %4307 = vmatprep.subr.mxu1 %v3768_v17 }
 0x2a2   :  { %4308 = vmatpush3.msra.mxu1 %v3768_v17 }
 0x2a3   :  { %4309 = vmatprep.subr.mxu1 %v3767_v18 }
 0x2a4   :  { %4310 = vmatpush3.msra.mxu1 %v3767_v18 }
 0x2a5   :  { %4331 = vmatprep.subr.mxu1 %v3782_v20 }
 0x351   :  { %v4261_v26 = vpop.f32.mrf.mxu1 }
 0x353   :  { %v745_v27 = vpop.f32.mrf.mxu1 }
 0x355   :  { %v4264_v29 = vpop.f32.mrf.mxu1 }
 0x357   :  { %v4275_v30 = vpop.f32.mrf.mxu0  ;;  %v755_v33 = vpop.f32.mrf.mxu1 }
 0x358   :  { %v848_v31 = vadd.f32 %v4275_v30, %v4261_v26 }
 0x359   :  { %v842_v34 = vpop.f32.mrf.mxu0 }
 0x35a   :  { %v843_v35 = vadd.f32 %v842_v34, %v745_v27 }
 0x35b   :  { %v4289_v37 = vpop.f32.mrf.mxu1  ;;  %v4278_v40 = vpop.f32.mrf.mxu0 }
 0x35c   :  { %v964_v42 = vadd.f32 %v4289_v37, %v848_v31  ;;  %v858_v44 = vadd.f32 %v4278_v40, %v4264_v29 }
 0x35d   :  { %v944_v46 = vpop.f32.mrf.mxu1  ;;  %v852_v47 = vpop.f32.mrf.mxu0 }
 0x35e   :  { %v975_v48 = vadd.f32 %v3749_v38, %v964_v42  ;;  %v963_v49 = vadd.f32 %v944_v46, %v843_v35  ;;  %v853_v50 = vadd.f32 %v852_v47, %v755_v33 }
 0x35f   :  { %v4292_v51 = vpop.f32.mrf.mxu1 }
 0x360   :  { %v984_v52 = vmul.f32 1.442695, %v975_v48  ;;  %v974_v53 = vadd.f32 %v3749_v38, %v963_v49  ;;  %v966_v54 = vadd.f32 %v4292_v51, %v858_v44  ;;  %vm979_vm2 = vcmp.gt.f32.partialorder %v975_v48, 0.0 }
 0x361   :  { %v954_v55 = vpop.f32.mrf.mxu1 }
 0x362   :  { %4730 = vpow2.f32 %v984_v52  ;;  %v982_v57 = vmul.f32 1.442695, %v974_v53  ;;  %v977_v58 = vadd.f32 %v3749_v38, %v966_v54  ;;  %v965_v60 = vadd.f32 %v954_v55, %v853_v50 }
 0x363   :  { %vm978_vm0 = vcmp.gt.f32.partialorder %v974_v53, 0.0 }
 0x364   :  { %4732 = vpow2.f32 %v982_v57  ;;  %v988_v61 = vmul.f32 1.442695, %v977_v58  ;;  %v976_v62 = vadd.f32 %v3749_v38, %v965_v60  ;;  %vm981_vm5 = vcmp.gt.f32.partialorder %v977_v58, 0.0  ;;  %v3781_v57 = vld [vmem:[%s5987_s9 + $0xb0] sm:$0xff] }
 0x366   :  { %4734 = vpow2.f32 %v988_v61  ;;  %v986_v63 = vmul.f32 1.442695, %v976_v62  ;;  %vm980_vm3 = vcmp.gt.f32.partialorder %v976_v62, 0.0 }
 0x368   :  { %4736 = vpow2.f32 %v986_v63 }
 0x36f   :  { %v4731_v0 = vpop.eup %4730 }
 0x370   :  { %v3751_v3 = vadd.f32 -1.0, %v4731_v0 }
 0x371   :  { %v4733_v2 = vpop.eup %4732 }
 0x372   :  { %v3750_v4 = vadd.f32 -1.0, %v4733_v2  ;;  %v995_v1 = vsel %vm979_vm2, %v975_v48, %v3751_v3  ;;  %vm4848_vm2 = vmmov 0  }
 0x373   :  { %v4735_v5 = vpop.eup %4734 }
 0x374   :  { %v994_v6 = vsel %vm978_vm0, %v974_v53, %v3750_v4  ;;  %v3753_v8 = vadd.f32 -1.0, %v4735_v5  ;;  %v3780_v4 = vld [vmem:[%s5987_s9 + $0xa8] sm:$0xff] }
 0x375   :  { %v4737_v7 = vpop.eup %4736  ;;  %4297 = vmatprep.mubr.msk.f32.mxu0 %vm328_vm4, %v994_v6 }
 0x376   :  { %4298 = vmatmul.mubr.msk.f32.vlgmr.msra.gmra.mxu0 %vm328_vm4, %v995_v1  ;;  %v3752_v9 = vadd.f32 -1.0, %v4737_v7  ;;  %v997_v12 = vsel %vm981_vm5, %v977_v58, %v3753_v8  ;;  %vm1821_vm5 = vcmask 228352  }
 0x377   :  { %4318 = vmatpush3.msra.mxu0 %v3766_v16 }
 0x378   :  { %v996_v11 = vsel %vm980_vm3, %v976_v62, %v3752_v9  ;;  %4319 = vmatprep.subr.mxu0 %v3765_v19  ;;  %vm1843_vm3 = vcmask 1043456  }
 0x379   :  { %4300 = vmatprep.mubr.msk.f32.mxu0 %vm328_vm4, %v996_v11  ;;  %4320 = vmatpush3.msra.mxu0 %v3765_v19 }
 0x37a   :  { %4301 = vmatmul.mubr.msk.f32.gmra.mxu0 %vm328_vm4, %v997_v12  ;;  %4321 = vmatprep.subr.mxu0 %v3764_v21 }
 0x37b   :  { %4322 = vmatpush3.msra.mxu0 %v3764_v21 }
 0x37c   :  { %4323 = vmatprep.subr.mxu0 %v3763_v23 }
 0x37d   :  { %4324 = vmatpush3.msra.mxu0 %v3763_v23 }
 0x436   :  { %v4299_v25 = vpop.f32.mrf.mxu0 }
 0x437   :  { %v1091_v26 = vadd.f32 %v4299_v25, %v3754_v24 }
 0x438   :  { %v1085_v27 = vpop.f32.mrf.mxu0 }
 0x439   :  { %v5221_v29 = vadd.f32 %v1091_v26, %v5103_v28  ;;  %v1086_v30 = vadd.f32 %v3754_v24, %v1085_v27  ;;  %v3788_v27 = vld [vmem:[%s5988_s10 + $0x1] ss:$0 sm:$0xff] }
 0x43a   :  { %v4302_v31 = vpop.f32.mrf.mxu0 }
 0x43b   :  { %v1114_v33 = vmul.f32 1.442695, %v5221_v29  ;;  %v5225_v34 = vadd.f32 %v1086_v30, %v5106_v32  ;;  %v1101_v35 = vadd.f32 %v4302_v31, %v3754_v24  ;;  %vm1109_vm6 = vcmp.gt.f32.partialorder %v5221_v29, 0.0 }
 0x43c   :  { %v1095_v37 = vpop.f32.mrf.mxu0 }
 0x43d   :  { %4738 = vpow2.f32 %v1114_v33  ;;  %v1112_v38 = vmul.f32 1.442695, %v5225_v34  ;;  %v5229_v40 = vadd.f32 %v1101_v35, %v5109_v36  ;;  %v1096_v42 = vadd.f32 %v3754_v24, %v1095_v37 }
 0x43e   :  { %vm1108_vm7 = vcmp.gt.f32.partialorder %v5225_v34, 0.0 }
 0x43f   :  { %4740 = vpow2.f32 %v1112_v38  ;;  %v1118_v28 = vmul.f32 1.442695, %v5229_v40  ;;  %v5233_v44 = vadd.f32 %v1096_v42, %v5112_v39  ;;  %vm1111_vm8 = vcmp.gt.f32.partialorder %v5229_v40, 0.0 }
 0x441   :  { %4742 = vpow2.f32 %v1118_v28  ;;  %v1116_v46 = vmul.f32 1.442695, %v5233_v44  ;;  %vm1110_vm9 = vcmp.gt.f32.partialorder %v5233_v44, 0.0 }
 0x443   :  { %4744 = vpow2.f32 %v1116_v46 }
 0x44a   :  { %v4739_v32 = vpop.eup %4738 }
 0x44b   :  { %v3760_v47 = vadd.f32 -1.0, %v4739_v32 }
 0x44c   :  { %v4741_v48 = vpop.eup %4740 }
 0x44d   :  { %v3759_v49 = vadd.f32 -1.0, %v4741_v48  ;;  %v1125_v36 = vsel %vm1109_vm6, %v5221_v29, %v3760_v47 }
 0x44e   :  { %v4743_v50 = vpop.eup %4742  ;;  %v1133_v55 = vrot.slane %v1125_v36, 7  ;;  %v1149_v58 = vrot.slane %v1125_v36, 1 }
 0x44f   :  { %v1124_v51 = vsel %vm1108_vm7, %v5225_v34, %v3759_v49  ;;  %v3762_v52 = vadd.f32 -1.0, %v4743_v50 }
 0x450   :  { %v4745_v39 = vpop.eup %4744  ;;  %v1132_v53 = vrot.slane %v1124_v51, 7  ;;  %v1148_v54 = vrot.slane %v1124_v51, 1  ;;  %4311 = vmatprep.mubr.msk.f32.mxu1 %vm158_vm1, %v1124_v51 }
 0x451   :  { %4312 = vmatmul.mubr.msk.f32.vlgmr.msra.gmra.mxu1 %vm158_vm1, %v1125_v36  ;;  %v3761_v60 = vadd.f32 -1.0, %v4745_v39  ;;  %v1127_v61 = vsel %vm1111_vm8, %v5229_v40, %v3762_v52 }
 0x452   :  { %v1143_v62 = vsel %vm587_vm13, 0.0, %v1132_v53  ;;  %v1134_v63 = vsel %vm587_vm13, %v1132_v53, %v1133_v55  ;;  %4332 = vmatpush3.msra.mxu1 %v3782_v20  ;;  %v1150_v5 = vsel %vm624_vm11, %v1148_v54, %v1149_v58  ;;  %v1137_v1 = vrot.slane %v1127_v61, 7 }
 0x453   :  { %v1145_v0 = vmul.f32 %v1134_v63, %v5119_v45  ;;  %4333 = vmatprep.subr.mxu1 %v3781_v57  ;;  %v1126_v2 = vsel %vm1110_vm9, %v5233_v44, %v3761_v60  ;;  %v1144_v3 = vmul.f32 %v1143_v62, %v5115_v41  ;;  %v1160_v8 = vmul.f32 %v1150_v5, %v5117_v43  ;;  %v3779_v41 = vld [vmem:[%s5987_s9 + $0xa0] sm:$0xff]  ;;  %v3804_v5 = vld [vmem:[%s5981_s3 + $0x78] sm:$0xff] }
 0x454   :  { %v1135_v6 = vrot.slane %v1126_v2, 7  ;;  %v1151_v7 = vrot.slane %v1126_v2, 1  ;;  %4314 = vmatprep.mubr.msk.f32.mxu1 %vm158_vm1, %v1126_v2  ;;  %4334 = vmatpush3.msra.mxu1 %v3781_v57  ;;  %v1153_v45 = vrot.slane %v1127_v61, 1 }
 0x455   :  { %4315 = vmatmul.mubr.msk.f32.gmra.mxu1 %vm158_vm1, %v1127_v61  ;;  %4325 = vmatprep.mubr.msk.f32.mxu0 %vm158_vm1, %v1144_v3 }
 0x456   :  { %v1152_v9 = vsel %vm624_vm11, %v1149_v58, %v1151_v7  ;;  %4335 = vmatprep.subr.mxu1 %v3780_v4  ;;  %4326 = vmatmul.mubr.msk.f32.vlgmr.msra.gmra.mxu0 %vm158_vm1, %v1145_v0  ;;  %v1136_v11 = vsel %vm587_vm13, %v1133_v55, %v1135_v6  ;;  %v1138_v12 = vsel %vm587_vm13, %v1135_v6, %v1137_v1  ;;  %v1159_v17 = vsel %vm636_vm15, %v1153_v45, 0.0  ;;  %v3812_v6 = vld [vmem:[%s5981_s3 + $0x58] sm:$0xff]  ;;  %v3811_v1 = vld [vmem:[%s5981_s3 + $0x50] sm:$0xff] }
 0x457   :  { %v1161_v43 = vmul.f32 %v1152_v9, %v5126_v56  ;;  %4336 = vmatpush3.msra.mxu1 %v3780_v4  ;;  %4339 = vmatprep.mubr.msk.f32.mxu1 %vm158_vm1, %v1160_v8  ;;  %v1146_v13 = vmul.f32 %v1136_v11, %v5132_v59  ;;  %v1147_v14 = vmul.f32 %v1138_v12, %v5149_v10  ;;  %v3794_v59 = vld [vmem:[%s5989_s11 + $0x18] sm:$0xff]  ;;  %v3793_v10 = vld [vmem:[%s5989_s11 + $0x10] sm:$0xff]  ;;  %v3802_v8 = vld [vmem:[%s5981_s3 + $0x68] sm:$0xff] }
 0x458   :  { %4337 = vmatprep.subr.mxu1 %v3779_v41  ;;  %v1154_v16 = vsel %vm624_vm11, %v1151_v7, %v1153_v45  ;;  %v1163_v56 = vmul.f32 %v1159_v17, %v5172_v22  ;;  %4345 = vmatprep.subr.mxu0 %v3794_v59  ;;  %v3803_v7 = vld [vmem:[%s5981_s3 + $0x70] sm:$0xff]  ;;  %v3810_v45 = vld [vmem:[%s5981_s3 + $0x48] sm:$0xff]  ;;  %v3809_v9 = vld [vmem:[%s5981_s3 + $0x40] sm:$0xff] }
 0x459   :  { %4338 = vmatpush3.msra.mxu1 %v3779_v41  ;;  %4328 = vmatprep.mubr.msk.f32.mxu0 %vm158_vm1, %v1146_v13  ;;  %v1162_v18 = vmul.f32 %v1154_v16, %v5159_v15  ;;  %v3801_v41 = vld [vmem:[%s5981_s3 + $0x60] sm:$0xff] }
 0x45a   :  { %4340 = vmatmul.mubr.msk.f32.vlgmr.msra.gmra.mxu1 %vm158_vm1, %v1161_v43  ;;  %4329 = vmatmul.mubr.msk.f32.gmra.mxu0 %vm158_vm1, %v1147_v14  ;;  %v3796_v11 = vld [vmem:[%s5990_s12 + $0x1] ss:$0 sm:$0xff] }
 0x45b   :  { %4342 = vmatprep.mubr.msk.f32.mxu1 %vm158_vm1, %v1162_v18  ;;  %4346 = vmatpush3.msra.mxu0 %v3794_v59 }
 0x45c   :  { %4347 = vmatprep.subr.mxu0 %v3793_v10  ;;  %4355 = vmatprep.subr.mxu1 %v3804_v5 }
 0x45d   :  { %4348 = vmatpush3.msra.mxu0 %v3793_v10  ;;  %4356 = vmatpush3.msra.mxu1 %v3804_v5  ;;  %v3841_v5 = vld [vmem:[%s5982_s4 + $0x1] ss:$0 sm:$0xff] }
 0x45e   :  { %4343 = vmatmul.mubr.msk.f32.gmra.mxu1 %vm158_vm1, %v1163_v56  ;;  %4369 = vmatprep.subr.mxu0 %v3812_v6 }
 0x45f   :  { %4357 = vmatprep.subr.mxu1 %v3803_v7 }
 0x460   :  { %4358 = vmatpush3.msra.mxu1 %v3803_v7 }
 0x461   :  { %4359 = vmatprep.subr.mxu1 %v3802_v8 }
 0x462   :  { %4360 = vmatpush3.msra.mxu1 %v3802_v8 }
 0x463   :  { %4361 = vmatprep.subr.mxu1 %v3801_v41 }
 0x464   :  { %4362 = vmatpush3.msra.mxu1 %v3801_v41 }
 0x511   :  { %v4313_v15 = vpop.f32.mrf.mxu1 }
 0x513   :  { %v1248_v19 = vpop.f32.mrf.mxu1 }
 0x515   :  { %v4316_v20 = vpop.f32.mrf.mxu1 }
 0x516   :  { %v4327_v21 = vpop.f32.mrf.mxu0 }
 0x517   :  { %v1351_v23 = vadd.f32 %v4327_v21, %v4313_v15  ;;  %v1258_v22 = vpop.f32.mrf.mxu1 }
 0x518   :  { %v1345_v24 = vpop.f32.mrf.mxu0 }
 0x519   :  { %v1346_v25 = vadd.f32 %v1345_v24, %v1248_v19 }
 0x51a   :  { %v4341_v26 = vpop.f32.mrf.mxu1  ;;  %v4330_v30 = vpop.f32.mrf.mxu0 }
 0x51b   :  { %v1467_v31 = vadd.f32 %v4341_v26, %v1351_v23  ;;  %v1361_v33 = vadd.f32 %v4330_v30, %v4316_v20  ;;  %v3818_v26 = vld [vmem:[%s5984_s6 + $0x40] sm:$0xff]  ;;  %v3821_v30 = vld [vmem:[%s5984_s6 + $0x58] sm:$0xff] }
 0x51c   :  { %v1447_v35 = vpop.f32.mrf.mxu1  ;;  %v1355_v37 = vpop.f32.mrf.mxu0 }
 0x51d   :  { %v1479_v38 = vadd.f32 %v3788_v27, %v1467_v31  ;;  %v1466_v42 = vadd.f32 %v1447_v35, %v1346_v25  ;;  %v1356_v28 = vadd.f32 %v1355_v37, %v1258_v22  ;;  %v3817_v22 = vld [vmem:[%s5984_s6 + $0x38] sm:$0xff]  ;;  %v3820_v25 = vld [vmem:[%s5984_s6 + $0x50] sm:$0xff]  ;;  %v3819_v31 = vld [vmem:[%s5984_s6 + $0x48] sm:$0xff] }
 0x51e   :  { %v4344_v46 = vpop.f32.mrf.mxu1  ;;  %v1806_v35 = vld [vmem:[%s5984_s6] sm:$0xff]  ;;  %v3823_v37 = vld [vmem:[%s5984_s6 + $0x68] sm:$0xf] }
 0x51f   :  { %v1488_v32 = vmul.f32 1.442695, %v1479_v38  ;;  %v1478_v47 = vadd.f32 %v3788_v27, %v1466_v42  ;;  %v1469_v48 = vadd.f32 %v4344_v46, %v1361_v33  ;;  %vm1483_vm12 = vcmp.gt.f32.partialorder %v1479_v38, 0.0  ;;  %v3822_v33 = vld [vmem:[%s5984_s6 + $0x60] sm:$0xff]  ;;  %v1808_v42 = vld [vmem:[%s5984_s6 + $0x10] sm:$0xff] }
 0x520   :  { %v1457_v49 = vpop.f32.mrf.mxu1  ;;  %v1810_v46 = vld [vmem:[%s5984_s6 + $0x20] sm:$0xff] }
 0x521   :  { %4746 = vpow2.f32 %v1488_v32  ;;  %v1486_v36 = vmul.f32 1.442695, %v1478_v47  ;;  %v1481_v50 = vadd.f32 %v3788_v27, %v1469_v48  ;;  %v1468_v51 = vadd.f32 %v1457_v49, %v1356_v28  ;;  %v1809_v28 = vld [vmem:[%s5984_s6 + $0x18] sm:$0xff]  ;;  %v1811_v32 = vld [vmem:[%s5984_s6 + $0x28] sm:$0xff]  ;;  %v3869_v49 = vld [vmem:[%s5987_s9 + $0xf0] sm:$0xff] }
 0x522   :  { %vm1482_vm10 = vcmp.gt.f32.partialorder %v1478_v47, 0.0  ;;  %v3870_v48 = vld [vmem:[%s5987_s9 + $0xf8] sm:$0xff] }
 0x523   :  { %4748 = vpow2.f32 %v1486_v36  ;;  %v1492_v52 = vmul.f32 1.442695, %v1481_v50  ;;  %v1480_v39 = vadd.f32 %v3788_v27, %v1468_v51  ;;  %vm1485_vm0 = vcmp.gt.f32.partialorder %v1481_v50, 0.0  ;;  %v3868_v36 = vld [vmem:[%s5987_s9 + $0xe8] sm:$0xff]  ;;  %v3867_v51 = vld [vmem:[%s5987_s9 + $0xe0] sm:$0xff] }
 0x525   :  { %4750 = vpow2.f32 %v1492_v52  ;;  %v1490_v53 = vmul.f32 1.442695, %v1480_v39  ;;  %vm1484_vm14 = vcmp.gt.f32.partialorder %v1480_v39, 0.0  ;;  %v3865_v52 = vld [vmem:[%s5987_s9 + $0xd0] sm:$0xff] }
 0x527   :  { %4752 = vpow2.f32 %v1490_v53  ;;  %v3863_v53 = vld [vmem:[%s5987_s9 + $0xc0] sm:$0xff] }
 0x52e   :  { %v4747_v54 = vpop.eup %4746 }
 0x52f   :  { %v3790_v57 = vadd.f32 -1.0, %v4747_v54 }
 0x530   :  { %v4749_v55 = vpop.eup %4748 }
 0x531   :  { %v3789_v58 = vadd.f32 -1.0, %v4749_v55  ;;  %v1499_v63 = vsel %vm1483_vm12, %v1479_v38, %v3790_v57  ;;  %v1807_v38 = vld [vmem:[%s5984_s6 + $0x8] sm:$0xff] }
 0x532   :  { %v4751_v60 = vpop.eup %4750 }
 0x533   :  { %v1498_v61 = vsel %vm1482_vm10, %v1478_v47, %v3789_v58  ;;  %v3792_v0 = vadd.f32 -1.0, %v4751_v60  ;;  %v1812_v47 = vld [vmem:[%s5984_s6 + $0x30] sm:$0xf] }
 0x534   :  { %v4753_v62 = vpop.eup %4752  ;;  %4349 = vmatprep.mubr.msk.f32.mxu0 %vm328_vm4, %v1498_v61 }
 0x535   :  { %4350 = vmatmul.mubr.msk.f32.vlgmr.msra.gmra.mxu0 %vm328_vm4, %v1499_v63  ;;  %v3791_v2 = vadd.f32 -1.0, %v4753_v62  ;;  %v1501_v4 = vsel %vm1485_vm0, %v1481_v50, %v3792_v0  ;;  %v3866_v50 = vld [vmem:[%s5987_s9 + $0xd8] sm:$0xff] }
 0x536   :  { %4370 = vmatpush3.msra.mxu0 %v3812_v6 }
 0x537   :  { %v1500_v3 = vsel %vm1484_vm14, %v1480_v39, %v3791_v2  ;;  %4371 = vmatprep.subr.mxu0 %v3811_v1  ;;  %v3864_v39 = vld [vmem:[%s5987_s9 + $0xc8] sm:$0xff] }
 0x538   :  { %4352 = vmatprep.mubr.msk.f32.mxu0 %vm328_vm4, %v1500_v3  ;;  %4372 = vmatpush3.msra.mxu0 %v3811_v1 }
 0x539   :  { %4353 = vmatmul.mubr.msk.f32.gmra.mxu0 %vm328_vm4, %v1501_v4  ;;  %4373 = vmatprep.subr.mxu0 %v3810_v45 }
 0x53a   :  { %4374 = vmatpush3.msra.mxu0 %v3810_v45 }
 0x53b   :  { %4375 = vmatprep.subr.mxu0 %v3809_v9 }
 0x53c   :  { %4376 = vmatpush3.msra.mxu0 %v3809_v9 }
 0x5f5   :  { %v4351_v12 = vpop.f32.mrf.mxu0 }
 0x5f6   :  { %v1597_v43 = vadd.f32 %v4351_v12, %v3796_v11 }
 0x5f7   :  { %v1591_v13 = vpop.f32.mrf.mxu0 }
 0x5f8   :  { %v1592_v14 = vadd.f32 %v3796_v11, %v1591_v13  ;;  %v1611_v18 = vadd.f32 %v1597_v43, %v5221_v29  ;;  %v4847_v29 = vmov 0.0  }
 0x5f9   :  { %v4354_v16 = vpop.f32.mrf.mxu0  ;;  %4383 = vmatprep.subr.mxu0 %v4847_v29  ;;  %4694 = vmatprep.subr.mxu1 %v4847_v29 }
 0x5fa   :  { %v1610_v17 = vadd.f32 %v1592_v14, %v5225_v34  ;;  %v1607_v56 = vadd.f32 %v4354_v16, %v3796_v11 }
 0x5fb   :  { %v1601_v59 = vpop.f32.mrf.mxu0 }
 0x5fc   :  { %v1602_v10 = vadd.f32 %v3796_v11, %v1601_v59  ;;  %4363 = vmatprep.mubr.msk.f32.mxu1 %vm158_vm1, %v1610_v17  ;;  %4377 = vmatprep.mubr.msk.f32.mxu0 %vm158_vm1, %v1610_v17  ;;  %v1613_v19 = vadd.f32 %v1607_v56, %v5229_v40 }
 0x5fd   :  { %4364 = vmatmul.mubr.msk.f32.vlgmr.msra.gmra.mxu1 %vm158_vm1, %v1611_v18  ;;  %4378 = vmatmul.mubr.msk.f32.vlgmr.msra.gmra.mxu0 %vm158_vm1, %v1611_v18 }
 0x5fe   :  { %v1612_v15 = vadd.f32 %v1602_v10, %v5233_v44 }
 0x600   :  { %4366 = vmatprep.mubr.msk.f32.mxu1 %vm158_vm1, %v1612_v15  ;;  %4380 = vmatprep.mubr.msk.f32.mxu0 %vm158_vm1, %v1612_v15 }
 0x601   :  { %4367 = vmatmul.mubr.msk.f32.gmra.mxu1 %vm158_vm1, %v1613_v19  ;;  %4381 = vmatmul.mubr.msk.f32.gmra.mxu0 %vm158_vm1, %v1613_v19 }
 0x602   :  { %4391 = vmatprep.mubr.msk.f32.mxu0 %vm4848_vm2, %v4847_v29  ;;  %4400 = vmatprep.mubr.msk.f32.mxu1 %vm4848_vm2, %v4847_v29 }
 0x6bd   :  { %v4379_v34 = vpop.f32.mrf.mxu0  ;;  %v4365_v40 = vpop.f32.mrf.mxu1 }
 0x6bf   :  { %v1787_v44 = vpop.f32.mrf.mxu0  ;;  %v1697_v21 = vpop.f32.mrf.mxu1 }
 0x6c1   :  { %v4382_v20 = vpop.f32.mrf.mxu0  ;;  %v4368_v24 = vpop.f32.mrf.mxu1 }
 0x6c2   :  { %4384 = vmatpush3.msk.msra.mxu0 %vm1843_vm3, %v4382_v20  ;;  %4698 = vmatpush3.msk.msra.mxu1 %vm1843_vm3, %v4382_v20 }
 0x6c3   :  { %v1797_v23 = vpop.f32.mrf.mxu0  ;;  %4385 = vmatprep.subr.mxu0 %v4847_v29  ;;  %4695 = vmatprep.subr.mxu1 %v4847_v29  ;;  %v1707_v27 = vpop.f32.mrf.mxu1 }
 0x6c4   :  { %4386 = vmatpush3.msra.mxu0 %v1797_v23  ;;  %4699 = vmatpush3.msra.mxu1 %v1797_v23 }
 0x6c5   :  { %4387 = vmatprep.subr.mxu0 %v4847_v29  ;;  %4696 = vmatprep.subr.mxu1 %v4847_v29 }
 0x6c6   :  { %4388 = vmatpush3.msra.mxu0 %v4379_v34  ;;  %4700 = vmatpush3.msra.mxu1 %v4379_v34 }
 0x6c7   :  { %4389 = vmatprep.subr.mxu0 %v4847_v29  ;;  %4697 = vmatprep.subr.mxu1 %v4847_v29 }
 0x6c8   :  { %4390 = vmatpush3.msra.mxu0 %v1787_v44  ;;  %4701 = vmatpush3.msra.mxu1 %v1787_v44 }
 0x6c9   :  { %4392 = vmatmul.mubr.msk.f32.vlgmr.msra.gmra.mxu0 %vm1821_vm5, %v3817_v22  ;;  %4412 = vmatprep.subr.mxu0 %v4847_v29 }
 0x6ca   :  { %4413 = vmatpush3.msk.msra.mxu0 %vm1843_vm3, %v4368_v24  ;;  %4394 = vmatprep.mubr.msk.f32.mxu0 %vm4848_vm2, %v4847_v29 }
 0x6cb   :  { %4414 = vmatprep.subr.mxu0 %v4847_v29  ;;  %4401 = vmatmul.mubr.msk.f32.vlgmr.msra.gmra.mxu1 %vm1821_vm5, %v3820_v25 }
 0x6cc   :  { %4415 = vmatpush3.msra.mxu0 %v1707_v27  ;;  %4403 = vmatprep.mubr.msk.f32.mxu1 %vm4848_vm2, %v4847_v29 }
 0x6cd   :  { %4395 = vmatmul.mubr.msk.f32.gmra.mxu0 %vm1821_vm5, %v3818_v26  ;;  %4416 = vmatprep.subr.mxu0 %v4847_v29 }
 0x6ce   :  { %4417 = vmatpush3.msra.mxu0 %v4365_v40  ;;  %4397 = vmatprep.mubr.msk.f32.mxu0 %vm4848_vm2, %v4847_v29 }
 0x6cf   :  { %4418 = vmatprep.subr.mxu0 %v4847_v29  ;;  %4404 = vmatmul.mubr.msk.f32.gmra.mxu1 %vm1821_vm5, %v3821_v30 }
 0x6d0   :  { %4419 = vmatpush3.msra.mxu0 %v1697_v21  ;;  %4406 = vmatprep.mubr.msk.f32.mxu1 %vm4848_vm2, %v4847_v29 }
 0x6d1   :  { %4398 = vmatmul.mubr.msk.f32.gmra.mxu0 %vm1821_vm5, %v3819_v31  ;;  %4441 = vmatprep.subr.mxu1 %v4847_v29 }
 0x6d2   :  { %4420 = vmatprep.mubr.msk.f32.mxu0 %vm4848_vm2, %v4847_v29  ;;  %4470 = vmatprep.subr.mxu0 %v4847_v29 }
 0x6d3   :  { %4407 = vmatmul.mubr.msk.f32.gmra.mxu1 %vm1821_vm5, %v3822_v33 }
 0x6d4   :  { %4409 = vmatprep.mubr.msk.f32.mxu1 %vm4848_vm2, %v4847_v29  ;;  %4442 = vmatpush3.msra.mxu1 %v3870_v48 }
 0x6d5   :  { %4421 = vmatmul.mubr.msk.f32.vlgmr.msra.gmra.mxu0 %vm1821_vm5, %v1806_v35  ;;  %4443 = vmatprep.subr.mxu1 %v4847_v29 }
 0x6d6   :  { %4423 = vmatprep.mubr.msk.f32.mxu0 %vm4848_vm2, %v4847_v29  ;;  %4444 = vmatpush3.msra.mxu1 %v3869_v49 }
 0x6d7   :  { %4410 = vmatmul.mubr.msk.f32.gmra.mxu1 %vm1821_vm5, %v3823_v37  ;;  %4445 = vmatprep.subr.mxu1 %v4847_v29 }
 0x6d8   :  { %4449 = vmatprep.mubr.msk.f32.mxu1 %vm4848_vm2, %v4847_v29  ;;  %4446 = vmatpush3.msra.mxu1 %v3868_v36 }
 0x6d9   :  { %4424 = vmatmul.mubr.msk.f32.gmra.mxu0 %vm1821_vm5, %v1807_v38  ;;  %4447 = vmatprep.subr.mxu1 %v4847_v29 }
 0x6da   :  { %4426 = vmatprep.mubr.msk.f32.mxu0 %vm4848_vm2, %v4847_v29  ;;  %4471 = vmatpush3.msra.mxu0 %v3866_v50 }
 0x6db   :  { %4448 = vmatpush3.msra.mxu1 %v3867_v51  ;;  %4472 = vmatprep.subr.mxu0 %v4847_v29 }
 0x6dc   :  { %4473 = vmatpush3.msra.mxu0 %v3865_v52  ;;  %4499 = vmatprep.subr.mxu1 %v4847_v29 }
 0x6dd   :  { %4427 = vmatmul.mubr.msk.f32.gmra.mxu0 %vm1821_vm5, %v1808_v42  ;;  %4474 = vmatprep.subr.mxu0 %v4847_v29 }
 0x6de   :  { %4429 = vmatprep.mubr.msk.f32.mxu0 %vm4848_vm2, %v4847_v29  ;;  %4475 = vmatpush3.msra.mxu0 %v3864_v39 }
 0x6df   :  { %4476 = vmatprep.subr.mxu0 %v4847_v29 }
 0x6e0   :  { %4477 = vmatpush3.msra.mxu0 %v3863_v53 }
 0x6e1   :  { %4430 = vmatmul.mubr.msk.f32.gmra.mxu0 %vm1821_vm5, %v1809_v28  ;;  %4528 = vmatprep.subr.mxu0 %v4847_v29 }
 0x6e2   :  { %4432 = vmatprep.mubr.msk.f32.mxu0 %vm4848_vm2, %v4847_v29 }
 0x6e5   :  { %4433 = vmatmul.mubr.msk.f32.gmra.mxu0 %vm1821_vm5, %v1810_v46 }
 0x6e6   :  { %4435 = vmatprep.mubr.msk.f32.mxu0 %vm4848_vm2, %v4847_v29 }
 0x6e9   :  { %4436 = vmatmul.mubr.msk.f32.gmra.mxu0 %vm1821_vm5, %v1811_v32 }
 0x6ea   :  { %4438 = vmatprep.mubr.msk.f32.mxu0 %vm4848_vm2, %v4847_v29 }
 0x6ed   :  { %4439 = vmatmul.mubr.msk.f32.gmra.mxu0 %vm1821_vm5, %v1812_v47 }
 0x6ee   :  { %4478 = vmatprep.mubr.msk.f32.mxu0 %vm4848_vm2, %v4847_v29 }
 0x789   :  { %v1913_v54 = vpop.f32.mrf.mxu0 }
 0x78b   :  { %v4393_v55 = vpop.f32.mrf.mxu0  ;;  %v1928_v57 = vpop.f32.mrf.mxu1 }
 0x78d   :  { %v1918_v58 = vpop.f32.mrf.mxu0  ;;  %v4402_v60 = vpop.f32.mrf.mxu1 }
 0x78f   :  { %v4396_v61 = vpop.f32.mrf.mxu0  ;;  %v1933_v62 = vpop.f32.mrf.mxu1 }
 0x791   :  { %v1923_v63 = vpop.f32.mrf.mxu0  ;;  %v4405_v0 = vpop.f32.mrf.mxu1 }
 0x793   :  { %v4399_v2 = vpop.f32.mrf.mxu0  ;;  %v1938_v3 = vpop.f32.mrf.mxu1 }
 0x795   :  { %v2037_v4 = vpop.f32.mrf.mxu0  ;;  %v4408_v6 = vpop.f32.mrf.mxu1 }
 0x796   :  { %v2038_v7 = vadd.f32 %v2037_v4, %v1913_v54  ;;  %v5482_v54 = vpop.permute.xlu0 %2201  ;;  %v3888_v6 = vld [vmem:[%s5987_s9 + $0x118] sm:$0xff] }
 0x797   :  { %v4422_v1 = vpop.f32.mrf.mxu0  ;;  %v1943_v8 = vpop.f32.mrf.mxu1 }
 0x798   :  { %v2079_v45 = vadd.f32 %v3841_v5, %v2038_v7 }
 0x799   :  { %v2042_v41 = vpop.f32.mrf.mxu0  ;;  %v4411_v9 = vpop.f32.mrf.mxu1 }
 0x79a   :  { %v2093_v11 = vmul.f32 1.442695, %v2079_v45  ;;  %v2043_v12 = vadd.f32 %v2042_v41, %v1918_v58  ;;  %vm2086_vm6 = vcmp.gt.f32.partialorder %v2079_v45, 0.0  ;;  %v3887_v41 = vld [vmem:[%s5987_s9 + $0x110] sm:$0xff] }
 0x79b   :  { %v4425_v43 = vpop.f32.mrf.mxu0 }
 0x79c   :  { %4754 = vpow2.f32 %v2093_v11  ;;  %v2080_v13 = vadd.f32 %v3841_v5, %v2043_v12 }
 0x79d   :  { %v2047_v14 = vpop.f32.mrf.mxu0 }
 0x79e   :  { %v2095_v16 = vmul.f32 1.442695, %v2080_v13  ;;  %v2048_v17 = vadd.f32 %v2047_v14, %v1923_v63  ;;  %vm2087_vm7 = vcmp.gt.f32.partialorder %v2080_v13, 0.0  ;;  %v5487_v63 = vpop.permute.xlu0 %2206 }
 0x79f   :  { %v4428_v18 = vpop.f32.mrf.mxu0 }
 0x7a0   :  { %4756 = vpow2.f32 %v2095_v16  ;;  %v2081_v56 = vadd.f32 %v3841_v5, %v2048_v17  ;;  %v3886_v18 = vld [vmem:[%s5987_s9 + $0x108] sm:$0xff] }
 0x7a1   :  { %v2052_v59 = vpop.f32.mrf.mxu0 }
 0x7a2   :  { %v2097_v10 = vmul.f32 1.442695, %v2081_v56  ;;  %v2053_v15 = vadd.f32 %v2052_v59, %v1928_v57  ;;  %vm2088_vm8 = vcmp.gt.f32.partialorder %v2081_v56, 0.0  ;;  %v5510_v43 = vpop.permute.xlu0 %2211 }
 0x7a3   :  { %v4431_v19 = vpop.f32.mrf.mxu0 }
 0x7a4   :  { %4758 = vpow2.f32 %v2097_v10  ;;  %v2082_v34 = vadd.f32 %v3841_v5, %v2053_v15 }
 0x7a5   :  { %v2057_v40 = vpop.f32.mrf.mxu0 }
 0x7a6   :  { %v2099_v44 = vmul.f32 1.442695, %v2082_v34  ;;  %v2058_v20 = vadd.f32 %v2057_v40, %v1933_v62  ;;  %vm2089_vm9 = vcmp.gt.f32.partialorder %v2082_v34, 0.0 }
 0x7a7   :  { %v4434_v21 = vpop.f32.mrf.mxu0 }
 0x7a8   :  { %4760 = vpow2.f32 %v2099_v44  ;;  %v2083_v23 = vadd.f32 %v3841_v5, %v2058_v20  ;;  %v3885_v20 = vld [vmem:[%s5987_s9 + $0x100] sm:$0xff] }
 0x7a9   :  { %v4755_v22 = vpop.eup %4754  ;;  %v2062_v24 = vpop.f32.mrf.mxu0 }
 0x7aa   :  { %v3842_v25 = vadd.f32 -1.0, %v4755_v22  ;;  %v2101_v26 = vmul.f32 1.442695, %v2083_v23  ;;  %v2063_v27 = vadd.f32 %v2062_v24, %v1938_v3  ;;  %vm2090_vm10 = vcmp.gt.f32.partialorder %v2083_v23, 0.0 }
 0x7ab   :  { %v4437_v30 = vpop.f32.mrf.mxu0 }
 0x7ac   :  { %v5473_v31 = vsel %vm2086_vm6, %v2079_v45, %v3842_v25  ;;  %4762 = vpow2.f32 %v2101_v26  ;;  %v2084_v33 = vadd.f32 %v3841_v5, %v2063_v27 }
 0x7ad   :  { %v4757_v35 = vpop.eup %4756  ;;  %v2143_v37 = vmul.f32 1.442695, %v5473_v31  ;;  %v2067_v38 = vpop.f32.mrf.mxu0  ;;  %vm2136_vm12 = vcmp.gt.f32.partialorder %v5473_v31, 0.0 }
 0x7ae   :  { %v3843_v42 = vadd.f32 -1.0, %v4757_v35  ;;  %v2103_v28 = vmul.f32 1.442695, %v2084_v33  ;;  %v2068_v46 = vadd.f32 %v2067_v38, %v1943_v8  ;;  %vm2091_vm14 = vcmp.gt.f32.partialorder %v2084_v33, 0.0  ;;  %v5564_v35 = vpop.permute.xlu1 %2264 }
 0x7af   :  { %4764 = vpow2.f32 %v2143_v37  ;;  %v4440_v32 = vpop.f32.mrf.mxu0 }
 0x7b0   :  { %v5476_v47 = vsel %vm2087_vm7, %v2080_v13, %v3843_v42  ;;  %4766 = vpow2.f32 %v2103_v28  ;;  %v2085_v48 = vadd.f32 %v3841_v5, %v2068_v46 }
 0x7b1   :  { %v4759_v49 = vpop.eup %4758  ;;  %v2145_v36 = vmul.f32 1.442695, %v5476_v47  ;;  %vm2137_vm0 = vcmp.gt.f32.partialorder %v5476_v47, 0.0 }
 0x7b2   :  { %v3844_v50 = vadd.f32 -1.0, %v4759_v49  ;;  %v2105_v51 = vmul.f32 1.442695, %v2085_v48  ;;  %vm2092_vm3 = vcmp.gt.f32.partialorder %v2085_v48, 0.0 }
 0x7b3   :  { %4768 = vpow2.f32 %v2145_v36 }
 0x7b4   :  { %v5479_v52 = vsel %vm2088_vm8, %v2081_v56, %v3844_v50  ;;  %4770 = vpow2.f32 %v2105_v51  ;;  %v5585_v50 = vpop.permute.xlu1 %2269 }
 0x7b5   :  { %v4761_v39 = vpop.eup %4760  ;;  %v2147_v53 = vmul.f32 1.442695, %v5479_v52  ;;  %vm2138_vm5 = vcmp.gt.f32.partialorder %v5479_v52, 0.0 }
 0x7b6   :  { %v3845_v55 = vadd.f32 -1.0, %v4761_v39 }
 0x7b7   :  { %4772 = vpow2.f32 %v2147_v53 }
 0x7b8   :  { %v5484_v57 = vsel %vm2089_vm9, %v2082_v34, %v3845_v55 }
 0x7b9   :  { %v4763_v58 = vpop.eup %4762  ;;  %v2149_v60 = vmul.f32 1.442695, %v5484_v57  ;;  %vm2139_vm6 = vcmp.gt.f32.partialorder %v5484_v57, 0.0 }
 0x7ba   :  { %v3846_v61 = vadd.f32 -1.0, %v4763_v58 }
 0x7bb   :  { %4774 = vpow2.f32 %v2149_v60 }
 0x7bc   :  { %v4765_v62 = vpop.eup %4764  ;;  %v5489_v0 = vsel %vm2090_vm10, %v2083_v23, %v3846_v61  ;;  %v5544_v23 = vpop.permute.xlu0 %2216 }
 0x7bd   :  { %v4767_v2 = vpop.eup %4766  ;;  %v2151_v3 = vmul.f32 1.442695, %v5489_v0  ;;  %v3856_v4 = vadd.f32 -1.0, %v4765_v62  ;;  %vm2140_vm7 = vcmp.gt.f32.partialorder %v5489_v0, 0.0 }
 0x7be   :  { %v3847_v5 = vadd.f32 -1.0, %v4767_v2 }
 0x7bf   :  { %v5497_v7 = vsel %vm2136_vm12, %v5473_v31, %v3856_v4  ;;  %4776 = vpow2.f32 %v2151_v3 }
 0x7c0   :  { %v4769_v1 = vpop.eup %4768  ;;  %v5499_v8 = vsel %vm2091_vm14, %v2084_v33, %v3847_v5  ;;  %v2178_v45 = vrot.slane %v5497_v7, 7  ;;  %4450 = vmatmul.mubr.msk.f32.vlgmr.msra.gmra.mxu1 %vm158_vm1, %v5497_v7  ;;  %v5569_v38 = vpop.permute.xlu0 %2221  ;;  %v2241_v61 = vrot.slane %v5497_v7, 1 }
 0x7c1   :  { %v4771_v9 = vpop.eup %4770  ;;  %v2153_v11 = vmul.f32 1.442695, %v5499_v8  ;;  %4500 = vmatpush3.msra.mxu1 %v3888_v6  ;;  %4452 = vmatprep.mubr.msk.f32.mxu1 %vm4848_vm2, %v4847_v29  ;;  %v3857_v12 = vadd.f32 -1.0, %v4769_v1  ;;  %vm2141_vm8 = vcmp.gt.f32.partialorder %v5499_v8, 0.0  ;;  %v5606_v1 = vpop.permute.xlu1 %2274 }
 0x7c2   :  { %v3848_v13 = vadd.f32 -1.0, %v4771_v9  ;;  %v2198_v14 = vsel %vm587_vm13, 0.0, %v2178_v45  ;;  %4501 = vmatprep.subr.mxu1 %v4847_v29 }
 0x7c3   :  { %v2234_v16 = vmul.f32 %v5482_v54, %v2198_v14  ;;  %v5517_v17 = vsel %vm2137_vm0, %v5476_v47, %v3857_v12  ;;  %4502 = vmatpush3.msra.mxu1 %v3887_v41  ;;  %4778 = vpow2.f32 %v2153_v11 }
 0x7c4   :  { %v4773_v56 = vpop.eup %4772  ;;  %v5522_v59 = vsel %vm2092_vm3, %v2085_v48, %v3848_v13  ;;  %v2179_v10 = vrot.slane %v5517_v17, 7  ;;  %4453 = vmatmul.mubr.msk.f32.gmra.mxu1 %vm158_vm1, %v5517_v17  ;;  %4503 = vmatprep.subr.mxu1 %v4847_v29  ;;  %v2242_v51 = vrot.slane %v5517_v17, 1  ;;  %v5590_v58 = vpop.permute.xlu0 %2226 }
 0x7c5   :  { %v2155_v15 = vmul.f32 1.442695, %v5522_v59  ;;  %4479 = vmatmul.mubr.msk.f32.vlgmr.msra.gmra.mxu0 %vm158_vm1, %v2234_v16  ;;  %4455 = vmatprep.mubr.msk.f32.mxu1 %vm4848_vm2, %v4847_v29  ;;  %v3858_v19 = vadd.f32 -1.0, %v4773_v56  ;;  %vm2142_vm9 = vcmp.gt.f32.partialorder %v5522_v59, 0.0  ;;  %v5627_v16 = vpop.permute.xlu1 %2279 }
 0x7c6   :  { %4481 = vmatprep.mubr.msk.f32.mxu0 %vm4848_vm2, %v4847_v29  ;;  %v2180_v34 = vsel %vm587_vm13, %v2178_v45, %v2179_v10  ;;  %4504 = vmatpush3.msra.mxu1 %v3886_v18  ;;  %v2243_v3 = vsel %vm624_vm11, %v2241_v61, %v2242_v51 }
 0x7c7   :  { %v5537_v40 = vsel %vm2138_vm5, %v5479_v52, %v3858_v19  ;;  %v2235_v44 = vmul.f32 %v5487_v63, %v2180_v34  ;;  %4505 = vmatprep.subr.mxu1 %v4847_v29  ;;  %4780 = vpow2.f32 %v2155_v15  ;;  %v2297_v41 = vmul.f32 %v5564_v35, %v2243_v3 }
 0x7c8   :  { %v4775_v21 = vpop.eup %4774  ;;  %v2181_v22 = vrot.slane %v5537_v40, 7  ;;  %4456 = vmatmul.mubr.msk.f32.gmra.mxu1 %vm158_vm1, %v5537_v40  ;;  %v2244_v4 = vrot.slane %v5537_v40, 1  ;;  %v5611_v45 = vpop.permute.xlu0 %2231 }
 0x7c9   :  { %4482 = vmatmul.mubr.msk.f32.gmra.mxu0 %vm158_vm1, %v2235_v44  ;;  %4458 = vmatprep.mubr.msk.f32.mxu1 %vm4848_vm2, %v4847_v29  ;;  %v3859_v24 = vadd.f32 -1.0, %v4775_v21  ;;  %v5636_v19 = vpop.permute.xlu1 %2284 }
 0x7ca   :  { %4484 = vmatprep.mubr.msk.f32.mxu0 %vm4848_vm2, %v4847_v29  ;;  %v2182_v25 = vsel %vm587_vm13, %v2179_v10, %v2181_v22  ;;  %4506 = vmatpush3.msra.mxu1 %v3885_v20  ;;  %v2245_v13 = vsel %vm624_vm11, %v2242_v51, %v2244_v4 }
 0x7cb   :  { %v5557_v26 = vsel %vm2139_vm6, %v5484_v57, %v3859_v24  ;;  %v2236_v27 = vmul.f32 %v5510_v43, %v2182_v25  ;;  %4553 = vmatprep.subr.mxu1 %v4847_v29  ;;  %v2298_v14 = vmul.f32 %v5585_v50, %v2245_v13 }
 0x7cc   :  { %v4777_v30 = vpop.eup %4776  ;;  %v2183_v33 = vrot.slane %v5557_v26, 7  ;;  %4459 = vmatmul.mubr.msk.f32.gmra.mxu1 %vm158_vm1, %v5557_v26  ;;  %v2246_v11 = vrot.slane %v5557_v26, 1 }
 0x7cd   :  { %4485 = vmatmul.mubr.msk.f32.gmra.mxu0 %vm158_vm1, %v2236_v27  ;;  %4461 = vmatprep.mubr.msk.f32.mxu1 %vm4848_vm2, %v4847_v29  ;;  %v3860_v37 = vadd.f32 -1.0, %v4777_v30  ;;  %v5646_v21 = vpop.permute.xlu1 %2289  ;;  %v3906_v30 = vld [vmem:[%s5989_s11 + $0x28] sm:$0xff] }
 0x7ce   :  { %4487 = vmatprep.mubr.msk.f32.mxu0 %vm4848_vm2, %v4847_v29  ;;  %v2184_v42 = vsel %vm587_vm13, %v2181_v22, %v2183_v33  ;;  %v2247_v18 = vsel %vm624_vm11, %v2244_v4, %v2246_v11  ;;  %4529 = vmatpush3.msra.mxu0 %v3906_v30 }
 0x7cf   :  { %v2168_v28 = vsel %vm2140_vm7, %v5489_v0, %v3860_v37  ;;  %v2237_v46 = vmul.f32 %v5544_v23, %v2184_v42  ;;  %v2299_v56 = vmul.f32 %v5606_v1, %v2247_v18  ;;  %4530 = vmatprep.subr.mxu0 %v4847_v29  ;;  %v3930_v37 = vld [vmem:[%s5987_s9 + $0x158] sm:$0xff] }
 0x7d0   :  { %v4779_v32 = vpop.eup %4778  ;;  %v2185_v48 = vrot.slane %v2168_v28, 7  ;;  %4462 = vmatmul.mubr.msk.f32.gmra.mxu1 %vm158_vm1, %v2168_v28  ;;  %v2248_v17 = vrot.slane %v2168_v28, 1 }
 0x7d1   :  { %4488 = vmatmul.mubr.msk.f32.gmra.mxu0 %vm158_vm1, %v2237_v46  ;;  %4464 = vmatprep.mubr.msk.f32.mxu1 %vm4848_vm2, %v4847_v29  ;;  %v3861_v49 = vadd.f32 -1.0, %v4779_v32  ;;  %v5655_v26 = vpop.permute.xlu1 %2294 }
 0x7d2   :  { %4490 = vmatprep.mubr.msk.f32.mxu0 %vm4848_vm2, %v4847_v29  ;;  %v2186_v36 = vsel %vm587_vm13, %v2183_v33, %v2185_v48  ;;  %v2249_v15 = vsel %vm624_vm11, %v2246_v11, %v2248_v17  ;;  %v3905_v33 = vld [vmem:[%s5989_s11 + $0x20] sm:$0xff] }
 0x7d3   :  { %v2169_v39 = vsel %vm2141_vm8, %v5499_v8, %v3861_v49  ;;  %v2238_v53 = vmul.f32 %v5569_v38, %v2186_v36  ;;  %v2300_v34 = vmul.f32 %v5627_v16, %v2249_v15  ;;  %4531 = vmatpush3.msra.mxu0 %v3905_v33 }
 0x7d4   :  { %v4781_v55 = vpop.eup %4780  ;;  %v2187_v60 = vrot.slane %v2169_v39, 7  ;;  %4465 = vmatmul.mubr.msk.f32.gmra.mxu1 %vm158_vm1, %v2169_v39  ;;  %v2250_v10 = vrot.slane %v2169_v39, 1  ;;  %4582 = vmatprep.subr.mxu0 %v4847_v29 }
 0x7d5   :  { %4491 = vmatmul.mubr.msk.f32.gmra.mxu0 %vm158_vm1, %v2238_v53  ;;  %4467 = vmatprep.mubr.msk.f32.mxu1 %vm4848_vm2, %v4847_v29  ;;  %v3862_v62 = vadd.f32 -1.0, %v4781_v55 }
 0x7d6   :  { %4493 = vmatprep.mubr.msk.f32.mxu0 %vm4848_vm2, %v4847_v29  ;;  %v2188_v2 = vsel %vm587_vm13, %v2185_v48, %v2187_v60  ;;  %v2251_v44 = vsel %vm624_vm11, %v2248_v17, %v2250_v10 }
 0x7d7   :  { %v2170_v5 = vsel %vm2142_vm9, %v5522_v59, %v3862_v62  ;;  %v2239_v6 = vmul.f32 %v5590_v58, %v2188_v2  ;;  %v2301_v20 = vmul.f32 %v5636_v19, %v2251_v44 }
 0x7d8   :  { %v2189_v7 = vrot.slane %v2170_v5, 7  ;;  %4468 = vmatmul.mubr.msk.f32.gmra.mxu1 %vm158_vm1, %v2170_v5  ;;  %v2252_v40 = vrot.slane %v2170_v5, 1 }
 0x7d9   :  { %4494 = vmatmul.mubr.msk.f32.gmra.mxu0 %vm158_vm1, %v2239_v6  ;;  %4507 = vmatprep.mubr.msk.f32.mxu1 %vm4848_vm2, %v4847_v29 }
 0x7da   :  { %4496 = vmatprep.mubr.msk.f32.mxu0 %vm4848_vm2, %v4847_v29  ;;  %v2190_v9 = vsel %vm587_vm13, %v2187_v60, %v2189_v7  ;;  %v2253_v22 = vsel %vm624_vm11, %v2250_v10, %v2252_v40  ;;  %v2261_v25 = vsel %vm636_vm15, %v2252_v40, 0.0 }
 0x7db   :  { %v2240_v12 = vmul.f32 %v5611_v45, %v2190_v9  ;;  %v2302_v24 = vmul.f32 %v5646_v21, %v2253_v22  ;;  %v2303_v27 = vmul.f32 %v5655_v26, %v2261_v25 }
 0x7dc   :  { %4508 = vmatmul.mubr.msk.f32.vlgmr.msra.gmra.mxu1 %vm158_vm1, %v2297_v41 }
 0x7dd   :  { %4497 = vmatmul.mubr.msk.f32.gmra.mxu0 %vm158_vm1, %v2240_v12  ;;  %4510 = vmatprep.mubr.msk.f32.mxu1 %vm4848_vm2, %v4847_v29 }
 0x7de   :  { %4532 = vmatprep.mubr.msk.f32.mxu0 %vm4848_vm2, %v4847_v29  ;;  %4554 = vmatpush3.msra.mxu1 %v3930_v37 }
 0x7df   :  { %4555 = vmatprep.subr.mxu1 %v4847_v29 }
 0x7e0   :  { %4511 = vmatmul.mubr.msk.f32.gmra.mxu1 %vm158_vm1, %v2298_v14 }
 0x7e1   :  { %4513 = vmatprep.mubr.msk.f32.mxu1 %vm4848_vm2, %v4847_v29 }
 0x7e4   :  { %4514 = vmatmul.mubr.msk.f32.gmra.mxu1 %vm158_vm1, %v2299_v56  ;;  %v3897_v56 = vld [vmem:[%s5988_s10 + $0x2] ss:$0 sm:$0xff] }
 0x7e5   :  { %4516 = vmatprep.mubr.msk.f32.mxu1 %vm4848_vm2, %v4847_v29 }
 0x7e8   :  { %4517 = vmatmul.mubr.msk.f32.gmra.mxu1 %vm158_vm1, %v2300_v34 }
 0x7e9   :  { %4519 = vmatprep.mubr.msk.f32.mxu1 %vm4848_vm2, %v4847_v29 }
 0x7ec   :  { %4520 = vmatmul.mubr.msk.f32.gmra.mxu1 %vm158_vm1, %v2301_v20 }
 0x7ed   :  { %4522 = vmatprep.mubr.msk.f32.mxu1 %vm4848_vm2, %v4847_v29 }
 0x7f0   :  { %4523 = vmatmul.mubr.msk.f32.gmra.mxu1 %vm158_vm1, %v2302_v24 }
 0x7f1   :  { %4525 = vmatprep.mubr.msk.f32.mxu1 %vm4848_vm2, %v4847_v29 }
 0x7f4   :  { %4526 = vmatmul.mubr.msk.f32.gmra.mxu1 %vm158_vm1, %v2303_v27 }
 0x7f5   :  { %4561 = vmatprep.mubr.msk.f32.mxu1 %vm4848_vm2, %v4847_v29 }
 0x880   :  { %v2394_v42 = vpop.f32.mrf.mxu1 }
 0x882   :  { %v4451_v28 = vpop.f32.mrf.mxu1 }
 0x884   :  { %v2399_v46 = vpop.f32.mrf.mxu1 }
 0x885   :  { %v2515_v32 = vpop.f32.mrf.mxu0 }
 0x886   :  { %v4454_v48 = vpop.f32.mrf.mxu1  ;;  %v2516_v14 = vadd.f32 %v2515_v32, %v2394_v42 }
 0x887   :  { %v4480_v49 = vpop.f32.mrf.mxu0 }
 0x888   :  { %v2404_v36 = vpop.f32.mrf.mxu1 }
 0x889   :  { %v2520_v51 = vpop.f32.mrf.mxu0 }
 0x88a   :  { %v4457_v39 = vpop.f32.mrf.mxu1  ;;  %v2521_v40 = vadd.f32 %v2520_v51, %v2399_v46 }
 0x88b   :  { %v4483_v53 = vpop.f32.mrf.mxu0 }
 0x88c   :  { %v2409_v55 = vpop.f32.mrf.mxu1 }
 0x88d   :  { %v2525_v60 = vpop.f32.mrf.mxu0 }
 0x88e   :  { %v4460_v61 = vpop.f32.mrf.mxu1  ;;  %v2526_v30 = vadd.f32 %v2525_v60, %v2404_v36 }
 0x88f   :  { %v4486_v62 = vpop.f32.mrf.mxu0 }
 0x890   :  { %v2414_v2 = vpop.f32.mrf.mxu1 }
 0x891   :  { %v2530_v3 = vpop.f32.mrf.mxu0 }
 0x892   :  { %v4463_v4 = vpop.f32.mrf.mxu1  ;;  %v2531_v48 = vadd.f32 %v2530_v3, %v2409_v55 }
 0x893   :  { %v4489_v5 = vpop.f32.mrf.mxu0 }
 0x894   :  { %v2419_v6 = vpop.f32.mrf.mxu1 }
 0x895   :  { %v2535_v7 = vpop.f32.mrf.mxu0 }
 0x896   :  { %v4466_v41 = vpop.f32.mrf.mxu1  ;;  %v2536_v51 = vadd.f32 %v2535_v7, %v2414_v2 }
 0x897   :  { %v4492_v9 = vpop.f32.mrf.mxu0 }
 0x898   :  { %v2424_v11 = vpop.f32.mrf.mxu1 }
 0x899   :  { %v2540_v12 = vpop.f32.mrf.mxu0 }
 0x89a   :  { %v4469_v13 = vpop.f32.mrf.mxu1  ;;  %v2541_v60 = vadd.f32 %v2540_v12, %v2419_v6 }
 0x89b   :  { %v4495_v17 = vpop.f32.mrf.mxu0 }
 0x89c   :  { %v2641_v18 = vpop.f32.mrf.mxu1 }
 0x89d   :  { %v2675_v10 = vadd.f32 %v2641_v18, %v2516_v14  ;;  %v2545_v15 = vpop.f32.mrf.mxu0 }
 0x89e   :  { %v4509_v34 = vpop.f32.mrf.mxu1 }
 0x89f   :  { %v2690_v44 = vadd.f32 %v3897_v56, %v2675_v10  ;;  %v4498_v20 = vpop.f32.mrf.mxu0  ;;  %v2546_v34 = vadd.f32 %v2545_v15, %v2424_v11 }
 0x8a0   :  { %v2646_v22 = vpop.f32.mrf.mxu1 }
 0x8a1   :  { %v2704_v24 = vmul.f32 1.442695, %v2690_v44  ;;  %v2676_v25 = vadd.f32 %v2646_v22, %v2521_v40  ;;  %vm2697_vm10 = vcmp.gt.f32.partialorder %v2690_v44, 0.0 }
 0x8a2   :  { %v4512_v27 = vpop.f32.mrf.mxu1 }
 0x8a3   :  { %4782 = vpow2.f32 %v2704_v24  ;;  %v2691_v33 = vadd.f32 %v3897_v56, %v2676_v25 }
 0x8a4   :  { %v2651_v37 = vpop.f32.mrf.mxu1 }
 0x8a5   :  { %v2706_v42 = vmul.f32 1.442695, %v2691_v33  ;;  %v2677_v28 = vadd.f32 %v2651_v37, %v2526_v30  ;;  %vm2698_vm12 = vcmp.gt.f32.partialorder %v2691_v33, 0.0 }
 0x8a6   :  { %v4515_v32 = vpop.f32.mrf.mxu1 }
 0x8a7   :  { %4784 = vpow2.f32 %v2706_v42  ;;  %v2692_v49 = vadd.f32 %v3897_v56, %v2677_v28 }
 0x8a8   :  { %v2656_v39 = vpop.f32.mrf.mxu1 }
 0x8a9   :  { %v2708_v53 = vmul.f32 1.442695, %v2692_v49  ;;  %v2678_v61 = vadd.f32 %v2656_v39, %v2531_v48  ;;  %vm2699_vm14 = vcmp.gt.f32.partialorder %v2692_v49, 0.0 }
 0x8aa   :  { %v4518_v46 = vpop.f32.mrf.mxu1 }
 0x8ab   :  { %4786 = vpow2.f32 %v2708_v53  ;;  %v2693_v62 = vadd.f32 %v3897_v56, %v2678_v61  ;;  %v3929_v46 = vld [vmem:[%s5987_s9 + $0x150] sm:$0xff] }
 0x8ac   :  { %v2661_v4 = vpop.f32.mrf.mxu1  ;;  %4556 = vmatpush3.msra.mxu1 %v3929_v46 }
 0x8ad   :  { %v2710_v5 = vmul.f32 1.442695, %v2693_v62  ;;  %v2679_v41 = vadd.f32 %v2661_v4, %v2536_v51  ;;  %vm2700_vm0 = vcmp.gt.f32.partialorder %v2693_v62, 0.0  ;;  %4557 = vmatprep.subr.mxu1 %v4847_v29  ;;  %v3928_v51 = vld [vmem:[%s5987_s9 + $0x148] sm:$0xff]  ;;  %v3927_v4 = vld [vmem:[%s5987_s9 + $0x140] sm:$0xff] }
 0x8ae   :  { %v4521_v36 = vpop.f32.mrf.mxu1  ;;  %4558 = vmatpush3.msra.mxu1 %v3928_v51 }
 0x8af   :  { %4788 = vpow2.f32 %v2710_v5  ;;  %v2694_v9 = vadd.f32 %v3897_v56, %v2679_v41  ;;  %4559 = vmatprep.subr.mxu1 %v4847_v29  ;;  %v3925_v5 = vld [vmem:[%s5987_s9 + $0x130] sm:$0xff]  ;;  %v3924_v41 = vld [vmem:[%s5987_s9 + $0x128] sm:$0xff]  ;;  %v3923_v36 = vld [vmem:[%s5987_s9 + $0x120] sm:$0xff] }
 0x8b0   :  { %v4783_v13 = vpop.eup %4782  ;;  %v2666_v14 = vpop.f32.mrf.mxu1  ;;  %4560 = vmatpush3.msra.mxu1 %v3927_v4 }
 0x8b1   :  { %v3898_v17 = vadd.f32 -1.0, %v4783_v13  ;;  %v2712_v55 = vmul.f32 1.442695, %v2694_v9  ;;  %v2680_v3 = vadd.f32 %v2666_v14, %v2541_v60  ;;  %vm2701_vm3 = vcmp.gt.f32.partialorder %v2694_v9, 0.0  ;;  %4611 = vmatprep.subr.mxu1 %v4847_v29  ;;  %v3908_v60 = vld [vmem:[%s5990_s12 + $0x2] ss:$0 sm:$0xff] }
 0x8b2   :  { %v4524_v18 = vpop.f32.mrf.mxu1 }
 0x8b3   :  { %v2725_v10 = vsel %vm2697_vm10, %v2690_v44, %v3898_v17  ;;  %4790 = vpow2.f32 %v2712_v55  ;;  %v2695_v2 = vadd.f32 %v3897_v56, %v2680_v3 }
 0x8b4   :  { %v4785_v7 = vpop.eup %4784  ;;  %v2671_v40 = vpop.f32.mrf.mxu1  ;;  %4533 = vmatmul.mubr.msk.f32.vlgmr.msra.gmra.mxu0 %vm328_vm4, %v2725_v10 }
 0x8b5   :  { %v2714_v20 = vmul.f32 1.442695, %v2695_v2  ;;  %v2681_v22 = vadd.f32 %v2671_v40, %v2546_v34  ;;  %4535 = vmatprep.mubr.msk.f32.mxu0 %vm4848_vm2, %v4847_v29  ;;  %v3899_v6 = vadd.f32 -1.0, %v4785_v7  ;;  %vm2702_vm5 = vcmp.gt.f32.partialorder %v2695_v2, 0.0 }
 0x8b6   :  { %v4527_v12 = vpop.f32.mrf.mxu1 }
 0x8b7   :  { %4792 = vpow2.f32 %v2714_v20  ;;  %v2696_v24 = vadd.f32 %v3897_v56, %v2681_v22  ;;  %v2726_v25 = vsel %vm2698_vm12, %v2691_v33, %v3899_v6 }
 0x8b8   :  { %v4787_v27 = vpop.eup %4786  ;;  %4536 = vmatmul.mubr.msk.f32.gmra.mxu0 %vm328_vm4, %v2726_v25 }
 0x8b9   :  { %v2716_v11 = vmul.f32 1.442695, %v2696_v24  ;;  %4538 = vmatprep.mubr.msk.f32.mxu0 %vm4848_vm2, %v4847_v29  ;;  %v3900_v15 = vadd.f32 -1.0, %v4787_v27  ;;  %vm2703_vm6 = vcmp.gt.f32.partialorder %v2696_v24, 0.0 }
 0x8bb   :  { %4794 = vpow2.f32 %v2716_v11  ;;  %v2727_v44 = vsel %vm2699_vm14, %v2692_v49, %v3900_v15 }
 0x8bc   :  { %v4789_v30 = vpop.eup %4788  ;;  %4539 = vmatmul.mubr.msk.f32.gmra.mxu0 %vm328_vm4, %v2727_v44 }
 0x8bd   :  { %4541 = vmatprep.mubr.msk.f32.mxu0 %vm4848_vm2, %v4847_v29  ;;  %v3901_v37 = vadd.f32 -1.0, %v4789_v30 }
 0x8bf   :  { %v2728_v56 = vsel %vm2700_vm0, %v2693_v62, %v3901_v37  ;;  %v3926_v62 = vld [vmem:[%s5987_s9 + $0x138] sm:$0xff] }
 0x8c0   :  { %v4791_v33 = vpop.eup %4790  ;;  %4542 = vmatmul.mubr.msk.f32.gmra.mxu0 %vm328_vm4, %v2728_v56 }
 0x8c1   :  { %4544 = vmatprep.mubr.msk.f32.mxu0 %vm4848_vm2, %v4847_v29  ;;  %v3902_v42 = vadd.f32 -1.0, %v4791_v33  ;;  %4583 = vmatpush3.msra.mxu0 %v3926_v62 }
 0x8c2   :  { %4584 = vmatprep.subr.mxu0 %v4847_v29 }
 0x8c3   :  { %v2729_v28 = vsel %vm2701_vm3, %v2694_v9, %v3902_v42  ;;  %4585 = vmatpush3.msra.mxu0 %v3925_v5 }
 0x8c4   :  { %v4793_v32 = vpop.eup %4792  ;;  %4545 = vmatmul.mubr.msk.f32.gmra.mxu0 %vm328_vm4, %v2729_v28  ;;  %4586 = vmatprep.subr.mxu0 %v4847_v29 }
 0x8c5   :  { %4547 = vmatprep.mubr.msk.f32.mxu0 %vm4848_vm2, %v4847_v29  ;;  %v3903_v48 = vadd.f32 -1.0, %v4793_v32  ;;  %4587 = vmatpush3.msra.mxu0 %v3924_v41  ;;  %v3946_v41 = vld [vmem:[%s5987_s9 + $0x168] sm:$0xff] }
 0x8c6   :  { %4588 = vmatprep.subr.mxu0 %v4847_v29 }
 0x8c7   :  { %v2730_v49 = vsel %vm2702_vm5, %v2695_v2, %v3903_v48  ;;  %4589 = vmatpush3.msra.mxu0 %v3923_v36 }
 0x8c8   :  { %v4795_v39 = vpop.eup %4794  ;;  %4548 = vmatmul.mubr.msk.f32.gmra.mxu0 %vm328_vm4, %v2730_v49  ;;  %4640 = vmatprep.subr.mxu0 %v4847_v29 }
 0x8c9   :  { %4550 = vmatprep.mubr.msk.f32.mxu0 %vm4848_vm2, %v4847_v29  ;;  %v3904_v53 = vadd.f32 -1.0, %v4795_v39  ;;  %v3947_v39 = vld [vmem:[%s5987_s9 + $0x170] sm:$0xff] }
 0x8cb   :  { %v2731_v61 = vsel %vm2703_vm6, %v2696_v24, %v3904_v53 }
 0x8cc   :  { %4551 = vmatmul.mubr.msk.f32.gmra.mxu0 %vm328_vm4, %v2731_v61 }
 0x8cd   :  { %4590 = vmatprep.mubr.msk.f32.mxu0 %vm4848_vm2, %v4847_v29 }
 0x974   :  { %v2830_v9 = vpop.f32.mrf.mxu0 }
 0x975   :  { %v2831_v13 = vadd.f32 %v3908_v60, %v2830_v9 }
 0x976   :  { %v4534_v14 = vpop.f32.mrf.mxu0 }
 0x977   :  { %v5731_v17 = vadd.f32 %v2831_v13, %v5473_v31 }
 0x978   :  { %v2835_v55 = vpop.f32.mrf.mxu0 }
 0x979   :  { %v2878_v3 = vmul.f32 1.442695, %v5731_v17  ;;  %v2836_v18 = vadd.f32 %v3908_v60, %v2835_v55  ;;  %vm2871_vm7 = vcmp.gt.f32.partialorder %v5731_v17, 0.0  ;;  %v3945_v55 = vld [vmem:[%s5987_s9 + $0x160] sm:$0xff] }
 0x97a   :  { %v4537_v10 = vpop.f32.mrf.mxu0 }
 0x97b   :  { %4796 = vpow2.f32 %v2878_v3  ;;  %v5735_v34 = vadd.f32 %v2836_v18, %v5476_v47 }
 0x97c   :  { %v2840_v2 = vpop.f32.mrf.mxu0 }
 0x97d   :  { %v2880_v7 = vmul.f32 1.442695, %v5735_v34  ;;  %v2841_v40 = vadd.f32 %v3908_v60, %v2840_v2  ;;  %vm2872_vm8 = vcmp.gt.f32.partialorder %v5735_v34, 0.0 }
 0x97e   :  { %v4540_v20 = vpop.f32.mrf.mxu0 }
 0x97f   :  { %4798 = vpow2.f32 %v2880_v7  ;;  %v5739_v22 = vadd.f32 %v2841_v40, %v5479_v52 }
 0x980   :  { %v2845_v31 = vpop.f32.mrf.mxu0 }
 0x981   :  { %v2882_v6 = vmul.f32 1.442695, %v5739_v22  ;;  %v2846_v12 = vadd.f32 %v3908_v60, %v2845_v31  ;;  %vm2873_vm9 = vcmp.gt.f32.partialorder %v5739_v22, 0.0 }
 0x982   :  { %v4543_v24 = vpop.f32.mrf.mxu0 }
 0x983   :  { %4800 = vpow2.f32 %v2882_v6  ;;  %v5743_v25 = vadd.f32 %v2846_v12, %v5484_v57  ;;  %v3948_v57 = vld [vmem:[%s5987_s9 + $0x178] sm:$0xff] }
 0x984   :  { %v2850_v47 = vpop.f32.mrf.mxu0 }
 0x985   :  { %v2884_v27 = vmul.f32 1.442695, %v5743_v25  ;;  %v2851_v11 = vadd.f32 %v3908_v60, %v2850_v47  ;;  %vm2874_vm10 = vcmp.gt.f32.partialorder %v5743_v25, 0.0 }
 0x986   :  { %v4546_v15 = vpop.f32.mrf.mxu0 }
 0x987   :  { %4802 = vpow2.f32 %v2884_v27  ;;  %v5747_v44 = vadd.f32 %v2851_v11, %v5489_v0 }
 0x988   :  { %v4797_v52 = vpop.eup %4796  ;;  %v2855_v30 = vpop.f32.mrf.mxu0 }
 0x989   :  { %v2886_v37 = vmul.f32 1.442695, %v5747_v44  ;;  %v2856_v56 = vadd.f32 %v3908_v60, %v2855_v30  ;;  %v3916_v33 = vadd.f32 -1.0, %v4797_v52  ;;  %vm2875_vm12 = vcmp.gt.f32.partialorder %v5747_v44, 0.0 }
 0x98a   :  { %v4549_v42 = vpop.f32.mrf.mxu0 }
 0x98b   :  { %4804 = vpow2.f32 %v2886_v37  ;;  %v5755_v28 = vadd.f32 %v2856_v56, %v5499_v8  ;;  %v5758_v0 = vsel %vm2871_vm7, %v5731_v17, %v3916_v33 }
 0x98c   :  { %v4799_v32 = vpop.eup %4798  ;;  %v2860_v48 = vpop.f32.mrf.mxu0  ;;  %v2913_v49 = vrot.slane %v5758_v0, 7  ;;  %4562 = vmatmul.mubr.msk.f32.vlgmr.msra.gmra.mxu1 %vm158_vm1, %v5758_v0  ;;  %v2941_v56 = vrot.slane %v5758_v0, 1 }
 0x98d   :  { %v2888_v53 = vmul.f32 1.442695, %v5755_v28  ;;  %v2861_v61 = vadd.f32 %v3908_v60, %v2860_v48  ;;  %4612 = vmatpush3.msra.mxu1 %v3948_v57  ;;  %4564 = vmatprep.mubr.msk.f32.mxu1 %vm4848_vm2, %v4847_v29  ;;  %v3917_v8 = vadd.f32 -1.0, %v4799_v32  ;;  %vm2876_vm14 = vcmp.gt.f32.partialorder %v5755_v28, 0.0 }
 0x98e   :  { %v2933_v46 = vsel %vm587_vm13, 0.0, %v2913_v49  ;;  %v4552_v51 = vpop.f32.mrf.mxu0  ;;  %4613 = vmatprep.subr.mxu1 %v4847_v29 }
 0x98f   :  { %4806 = vpow2.f32 %v2888_v53  ;;  %v5773_v62 = vadd.f32 %v2861_v61, %v5522_v59  ;;  %v2934_v4 = vmul.f32 %v2933_v46, %v5482_v54  ;;  %v5777_v5 = vsel %vm2872_vm8, %v5735_v34, %v3917_v8  ;;  %4614 = vmatpush3.msra.mxu1 %v3947_v39 }
 0x990   :  { %v4801_v36 = vpop.eup %4800  ;;  %v2914_v60 = vrot.slane %v5777_v5, 7  ;;  %4565 = vmatmul.mubr.msk.f32.gmra.mxu1 %vm158_vm1, %v5777_v5  ;;  %4615 = vmatprep.subr.mxu1 %v4847_v29  ;;  %v2942_v15 = vrot.slane %v5777_v5, 1 }
 0x991   :  { %v2890_v59 = vmul.f32 1.442695, %v5773_v62  ;;  %4591 = vmatmul.mubr.msk.f32.vlgmr.msra.gmra.mxu0 %vm158_vm1, %v2934_v4  ;;  %4567 = vmatprep.mubr.msk.f32.mxu1 %vm4848_vm2, %v4847_v29  ;;  %v3918_v54 = vadd.f32 -1.0, %v4801_v36  ;;  %vm2877_vm0 = vcmp.gt.f32.partialorder %v5773_v62, 0.0 }
 0x992   :  { %4593 = vmatprep.mubr.msk.f32.mxu0 %vm4848_vm2, %v4847_v29  ;;  %v2915_v9 = vsel %vm587_vm13, %v2913_v49, %v2914_v60  ;;  %4616 = vmatpush3.msra.mxu1 %v3946_v41 }
 0x993   :  { %4808 = vpow2.f32 %v2890_v59  ;;  %v5795_v13 = vsel %vm2873_vm9, %v5739_v22, %v3918_v54  ;;  %v2935_v14 = vmul.f32 %v2915_v9, %v5487_v63  ;;  %4617 = vmatprep.subr.mxu1 %v4847_v29  ;;  %v3538_v54 = vld [vmem:[%s5991_s13 + $0x10] sm:$0xff]  ;;  %v3537_v9 = vld [vmem:[%s5991_s13 + $0x8] sm:$0xff] }
 0x994   :  { %v4803_v3 = vpop.eup %4802  ;;  %v2916_v18 = vrot.slane %v5795_v13, 7  ;;  %4568 = vmatmul.mubr.msk.f32.gmra.mxu1 %vm158_vm1, %v5795_v13  ;;  %v2944_v57 = vrot.slane %v5795_v13, 1  ;;  %v3536_v13 = vld [vmem:[%s5991_s13] sm:$0xff] }
 0x995   :  { %4594 = vmatmul.mubr.msk.f32.gmra.mxu0 %vm158_vm1, %v2935_v14  ;;  %4570 = vmatprep.mubr.msk.f32.mxu1 %vm4848_vm2, %v4847_v29  ;;  %v3919_v10 = vadd.f32 -1.0, %v4803_v3 }
 0x996   :  { %4596 = vmatprep.mubr.msk.f32.mxu0 %vm4848_vm2, %v4847_v29  ;;  %v2917_v63 = vsel %vm587_vm13, %v2914_v60, %v2916_v18  ;;  %4618 = vmatpush3.msra.mxu1 %v3945_v55 }
 0x997   :  { %v5813_v2 = vsel %vm2874_vm10, %v5743_v25, %v3919_v10  ;;  %v2936_v7 = vmul.f32 %v2917_v63, %v5510_v43  ;;  %4665 = vmatprep.subr.mxu1 %v4847_v29 }
 0x998   :  { %v4805_v40 = vpop.eup %4804  ;;  %v2918_v20 = vrot.slane %v5813_v2, 7  ;;  %4571 = vmatmul.mubr.msk.f32.gmra.mxu1 %vm158_vm1, %v5813_v2  ;;  %v2946_v53 = vrot.slane %v5813_v2, 1 }
 0x999   :  { %4597 = vmatmul.mubr.msk.f32.gmra.mxu0 %vm158_vm1, %v2936_v7  ;;  %4573 = vmatprep.mubr.msk.f32.mxu1 %vm4848_vm2, %v4847_v29  ;;  %v3920_v31 = vadd.f32 -1.0, %v4805_v40 }
 0x99a   :  { %4599 = vmatprep.mubr.msk.f32.mxu0 %vm4848_vm2, %v4847_v29  ;;  %v2919_v43 = vsel %vm587_vm13, %v2916_v18, %v2918_v20  ;;  %v2947_v46 = vsel %vm624_vm11, %v2944_v57, %v2946_v53 }
 0x99b   :  { %v2903_v6 = vsel %vm2875_vm12, %v5747_v44, %v3920_v31  ;;  %v2937_v12 = vmul.f32 %v2919_v43, %v5544_v23 }
 0x99c   :  { %v4807_v24 = vpop.eup %4806  ;;  %v2920_v47 = vrot.slane %v2903_v6, 7  ;;  %4574 = vmatmul.mubr.msk.f32.gmra.mxu1 %vm158_vm1, %v2903_v6  ;;  %v2948_v8 = vrot.slane %v2903_v6, 1 }
 0x99d   :  { %4600 = vmatmul.mubr.msk.f32.gmra.mxu0 %vm158_vm1, %v2937_v12  ;;  %4576 = vmatprep.mubr.msk.f32.mxu1 %vm4848_vm2, %v4847_v29  ;;  %v3921_v27 = vadd.f32 -1.0, %v4807_v24 }
 0x99e   :  { %4602 = vmatprep.mubr.msk.f32.mxu0 %vm4848_vm2, %v4847_v29  ;;  %v2921_v11 = vsel %vm587_vm13, %v2918_v20, %v2920_v47  ;;  %v2949_v4 = vsel %vm624_vm11, %v2946_v53, %v2948_v8 }
 0x99f   :  { %v2904_v23 = vsel %vm2876_vm14, %v5755_v28, %v3921_v27  ;;  %v2938_v52 = vmul.f32 %v2921_v11, %v5569_v38  ;;  %v2943_v38 = vsel %vm624_vm11, %v2941_v56, %v2942_v15 }
 0x9a0   :  { %v4809_v30 = vpop.eup %4808  ;;  %v2922_v37 = vrot.slane %v2904_v23, 7  ;;  %4577 = vmatmul.mubr.msk.f32.gmra.mxu1 %vm158_vm1, %v2904_v23  ;;  %v2962_v49 = vmul.f32 %v2943_v38, %v5564_v35  ;;  %v2950_v51 = vrot.slane %v2904_v23, 1 }
 0x9a1   :  { %4603 = vmatmul.mubr.msk.f32.gmra.mxu0 %vm158_vm1, %v2938_v52  ;;  %4579 = vmatprep.mubr.msk.f32.mxu1 %vm4848_vm2, %v4847_v29  ;;  %v3922_v33 = vadd.f32 -1.0, %v4809_v30 }
 0x9a2   :  { %4605 = vmatprep.mubr.msk.f32.mxu0 %vm4848_vm2, %v4847_v29  ;;  %v2923_v42 = vsel %vm587_vm13, %v2920_v47, %v2922_v37  ;;  %v2951_v41 = vsel %vm624_vm11, %v2948_v8, %v2950_v51 }
 0x9a3   :  { %v2905_v32 = vsel %vm2877_vm0, %v5773_v62, %v3922_v33  ;;  %v2939_v0 = vmul.f32 %v2923_v42, %v5590_v58  ;;  %v2945_v58 = vsel %vm624_vm11, %v2942_v15, %v2944_v57 }
 0x9a4   :  { %v2924_v48 = vrot.slane %v2905_v32, 7  ;;  %4580 = vmatmul.mubr.msk.f32.gmra.mxu1 %vm158_vm1, %v2905_v32  ;;  %v2963_v35 = vmul.f32 %v2945_v58, %v5585_v50  ;;  %v2965_v50 = vmul.f32 %v2949_v4, %v5627_v16  ;;  %v2952_v5 = vrot.slane %v2905_v32, 1  ;;  %v3957_v32 = vld [vmem:[%s5988_s10 + $0x3] ss:$0 sm:$0xff] }
 0x9a5   :  { %4606 = vmatmul.mubr.msk.f32.gmra.mxu0 %vm158_vm1, %v2939_v0  ;;  %4619 = vmatprep.mubr.msk.f32.mxu1 %vm4848_vm2, %v4847_v29 }
 0x9a6   :  { %4608 = vmatprep.mubr.msk.f32.mxu0 %vm4848_vm2, %v4847_v29  ;;  %v2925_v39 = vsel %vm587_vm13, %v2922_v37, %v2924_v48  ;;  %v2953_v36 = vsel %vm624_vm11, %v2950_v51, %v2952_v5  ;;  %v2961_v16 = vsel %vm636_vm15, %v2952_v5, 0.0 }
 0x9a7   :  { %v2940_v61 = vmul.f32 %v2925_v39, %v5611_v45  ;;  %v2964_v45 = vmul.f32 %v2947_v46, %v5606_v1  ;;  %v2966_v1 = vmul.f32 %v2951_v41, %v5636_v19  ;;  %v2967_v60 = vmul.f32 %v2953_v36, %v5646_v21  ;;  %v3966_v19 = vld [vmem:[%s5989_s11 + $0x38] sm:$0xff]  ;;  %v3965_v21 = vld [vmem:[%s5989_s11 + $0x30] sm:$0xff] }
 0x9a8   :  { %4620 = vmatmul.mubr.msk.f32.vlgmr.msra.gmra.mxu1 %vm158_vm1, %v2962_v49  ;;  %v2968_v59 = vmul.f32 %v2961_v16, %v5655_v26  ;;  %4641 = vmatpush3.msra.mxu0 %v3966_v19  ;;  %v3539_v26 = vld [vmem:[%s5991_s13 + $0x18] sm:$0xff] }
 0x9a9   :  { %4609 = vmatmul.mubr.msk.f32.gmra.mxu0 %vm158_vm1, %v2940_v61  ;;  %4622 = vmatprep.mubr.msk.f32.mxu1 %vm4848_vm2, %v4847_v29 }
 0x9aa   :  { %4644 = vmatprep.mubr.msk.f32.mxu0 %vm4848_vm2, %v4847_v29  ;;  %4642 = vmatprep.subr.mxu0 %v4847_v29 }
 0x9ab   :  { %4643 = vmatpush3.msra.mxu0 %v3965_v21  ;;  %4666 = vmatpush3.msra.mxu1 %v3539_v26 }
 0x9ac   :  { %4623 = vmatmul.mubr.msk.f32.gmra.mxu1 %vm158_vm1, %v2963_v35  ;;  %4667 = vmatprep.subr.mxu1 %v4847_v29 }
 0x9ad   :  { %4625 = vmatprep.mubr.msk.f32.mxu1 %vm4848_vm2, %v4847_v29  ;;  %4668 = vmatpush3.msra.mxu1 %v3538_v54 }
 0x9ae   :  { %4669 = vmatprep.subr.mxu1 %v4847_v29 }
 0x9af   :  { %4670 = vmatpush3.msra.mxu1 %v3537_v9 }
 0x9b0   :  { %4626 = vmatmul.mubr.msk.f32.gmra.mxu1 %vm158_vm1, %v2964_v45  ;;  %4671 = vmatprep.subr.mxu1 %v4847_v29 }
 0x9b1   :  { %4628 = vmatprep.mubr.msk.f32.mxu1 %vm4848_vm2, %v4847_v29  ;;  %4672 = vmatpush3.msra.mxu1 %v3536_v13 }
 0x9b4   :  { %4629 = vmatmul.mubr.msk.f32.gmra.mxu1 %vm158_vm1, %v2965_v50 }
 0x9b5   :  { %4631 = vmatprep.mubr.msk.f32.mxu1 %vm4848_vm2, %v4847_v29 }
 0x9b8   :  { %4632 = vmatmul.mubr.msk.f32.gmra.mxu1 %vm158_vm1, %v2966_v1 }
 0x9b9   :  { %4634 = vmatprep.mubr.msk.f32.mxu1 %vm4848_vm2, %v4847_v29 }
 0x9bc   :  { %4635 = vmatmul.mubr.msk.f32.gmra.mxu1 %vm158_vm1, %v2967_v60 }
 0x9bd   :  { %4637 = vmatprep.mubr.msk.f32.mxu1 %vm4848_vm2, %v4847_v29 }
 0x9c0   :  { %4638 = vmatmul.mubr.msk.f32.gmra.mxu1 %vm158_vm1, %v2968_v59 }
 0x9c1   :  { %4673 = vmatprep.mubr.msk.f32.mxu1 %vm4848_vm2, %v4847_v29 }
 0xa4c   :  { %v3059_v14 = vpop.f32.mrf.mxu1 }
 0xa4e   :  { %v4563_v55 = vpop.f32.mrf.mxu1 }
 0xa50   :  { %v3064_v3 = vpop.f32.mrf.mxu1 }
 0xa51   :  { %v3180_v18 = vpop.f32.mrf.mxu0 }
 0xa52   :  { %v4566_v10 = vpop.f32.mrf.mxu1  ;;  %v3181_v42 = vadd.f32 %v3180_v18, %v3059_v14 }
 0xa53   :  { %v4592_v63 = vpop.f32.mrf.mxu0 }
 0xa54   :  { %v3069_v2 = vpop.f32.mrf.mxu1 }
 0xa55   :  { %v3185_v7 = vpop.f32.mrf.mxu0 }
 0xa56   :  { %v4569_v40 = vpop.f32.mrf.mxu1  ;;  %v3186_v39 = vadd.f32 %v3185_v7, %v3064_v3 }
 0xa57   :  { %v4595_v20 = vpop.f32.mrf.mxu0 }
 0xa58   :  { %v3074_v31 = vpop.f32.mrf.mxu1 }
 0xa59   :  { %v3190_v43 = vpop.f32.mrf.mxu0 }
 0xa5a   :  { %v4572_v6 = vpop.f32.mrf.mxu1  ;;  %v3191_v45 = vadd.f32 %v3190_v43, %v3069_v2 }
 0xa5b   :  { %v4598_v12 = vpop.f32.mrf.mxu0 }
 0xa5c   :  { %v3079_v24 = vpop.f32.mrf.mxu1 }
 0xa5d   :  { %v3195_v47 = vpop.f32.mrf.mxu0 }
 0xa5e   :  { %v4575_v27 = vpop.f32.mrf.mxu1  ;;  %v3196_v1 = vadd.f32 %v3195_v47, %v3074_v31 }
 0xa5f   :  { %v4601_v11 = vpop.f32.mrf.mxu0 }
 0xa60   :  { %v3084_v15 = vpop.f32.mrf.mxu1 }
 0xa61   :  { %v3200_v23 = vpop.f32.mrf.mxu0 }
 0xa62   :  { %v4578_v52 = vpop.f32.mrf.mxu1  ;;  %v3201_v21 = vadd.f32 %v3200_v23, %v3079_v24 }
 0xa63   :  { %v4604_v30 = vpop.f32.mrf.mxu0 }
 0xa64   :  { %v3089_v37 = vpop.f32.mrf.mxu1 }
 0xa65   :  { %v3205_v56 = vpop.f32.mrf.mxu0 }
 0xa66   :  { %v4581_v33 = vpop.f32.mrf.mxu1  ;;  %v3206_v55 = vadd.f32 %v3205_v56, %v3084_v15 }
 0xa67   :  { %v4607_v38 = vpop.f32.mrf.mxu0 }
 0xa68   :  { %v3306_v57 = vpop.f32.mrf.mxu1 }
 0xa69   :  { %v3340_v0 = vadd.f32 %v3306_v57, %v3181_v42  ;;  %v3210_v48 = vpop.f32.mrf.mxu0 }
 0xa6a   :  { %v4621_v49 = vpop.f32.mrf.mxu1  ;;  %v3211_v31 = vadd.f32 %v3210_v48, %v3089_v37 }
 0xa6b   :  { %v3355_v53 = vadd.f32 %v3957_v32, %v3340_v0  ;;  %v4610_v61 = vpop.f32.mrf.mxu0 }
 0xa6c   :  { %v3311_v58 = vpop.f32.mrf.mxu1 }
 0xa6d   :  { %v3369_v35 = vmul.f32 1.442695, %v3355_v53  ;;  %v3341_v8 = vadd.f32 %v3311_v58, %v3186_v39  ;;  %vm3362_vm11 = vcmp.gt.f32.partialorder %v3355_v53, 0.0 }
 0xa6e   :  { %v4624_v46 = vpop.f32.mrf.mxu1 }
 0xa6f   :  { %4810 = vpow2.f32 %v3369_v35  ;;  %v3356_v51 = vadd.f32 %v3957_v32, %v3341_v8  ;;  %v3968_v35 = vld [vmem:[%s5990_s12 + $0x3] ss:$0 sm:$0xff] }
 0xa70   :  { %v3316_v4 = vpop.f32.mrf.mxu1 }
 0xa71   :  { %v3371_v50 = vmul.f32 1.442695, %v3356_v51  ;;  %v3342_v5 = vadd.f32 %v3316_v4, %v3191_v45  ;;  %vm3363_vm13 = vcmp.gt.f32.partialorder %v3356_v51, 0.0 }
 0xa72   :  { %v4627_v41 = vpop.f32.mrf.mxu1 }
 0xa73   :  { %4812 = vpow2.f32 %v3371_v50  ;;  %v3357_v36 = vadd.f32 %v3957_v32, %v3342_v5 }
 0xa74   :  { %v3321_v60 = vpop.f32.mrf.mxu1 }
 0xa75   :  { %v3373_v16 = vmul.f32 1.442695, %v3357_v36  ;;  %v3343_v59 = vadd.f32 %v3321_v60, %v3196_v1  ;;  %vm3364_vm15 = vcmp.gt.f32.partialorder %v3357_v36, 0.0 }
 0xa76   :  { %v4630_v19 = vpop.f32.mrf.mxu1 }
 0xa77   :  { %4814 = vpow2.f32 %v3373_v16  ;;  %v3358_v26 = vadd.f32 %v3957_v32, %v3343_v59 }
 0xa78   :  { %v3326_v54 = vpop.f32.mrf.mxu1 }
 0xa79   :  { %v3375_v9 = vmul.f32 1.442695, %v3358_v26  ;;  %v3344_v13 = vadd.f32 %v3326_v54, %v3201_v21  ;;  %vm3365_vm3 = vcmp.gt.f32.partialorder %v3358_v26, 0.0 }
 0xa7a   :  { %v4633_v14 = vpop.f32.mrf.mxu1 }
 0xa7b   :  { %4816 = vpow2.f32 %v3375_v9  ;;  %v3359_v3 = vadd.f32 %v3957_v32, %v3344_v13 }
 0xa7c   :  { %v4811_v18 = vpop.eup %4810  ;;  %v3331_v10 = vpop.f32.mrf.mxu1 }
 0xa7d   :  { %v3958_v63 = vadd.f32 -1.0, %v4811_v18  ;;  %v3377_v2 = vmul.f32 1.442695, %v3359_v3  ;;  %v3345_v7 = vadd.f32 %v3331_v10, %v3206_v55  ;;  %vm3366_vm5 = vcmp.gt.f32.partialorder %v3359_v3, 0.0  ;;  %v3976_v10 = vld [vmem:[%s5992_s14] ss:$0 sm:$0xff] }
 0xa7e   :  { %v4636_v40 = vpop.f32.mrf.mxu1  ;;  %s4849_s14 = smov [#allocation2]  }
 0xa7f   :  { %v3390_v20 = vsel %vm3362_vm11, %v3355_v53, %v3958_v63  ;;  %4818 = vpow2.f32 %v3377_v2  ;;  %v3360_v43 = vadd.f32 %v3957_v32, %v3345_v7  ;;  %s3680_s28 = sshll.u32 %s4849_s14, 4  ;;  %s3681_s28 = int_to_ptr.vmem [resolvable:$true] %s3680_s28 }
 0xa80   :  { %v4813_v6 = vpop.eup %4812  ;;  %v3336_v12 = vpop.f32.mrf.mxu1  ;;  %4645 = vmatmul.mubr.msk.f32.vlgmr.msra.gmra.mxu0 %vm328_vm4, %v3390_v20  ;;  %s4824_s0 = scalar_lea.vmem %s3681_s28, 896  ;;  %p4829_p1 = scmp.lt.s32.totalorder %s3681_s28, %s3681_s28 }
 0xa81   :  { %v3379_v24 = vmul.f32 1.442695, %v3360_v43  ;;  %v3346_v47 = vadd.f32 %v3336_v12, %v3211_v31  ;;  %4647 = vmatprep.mubr.msk.f32.mxu0 %vm4848_vm2, %v4847_v29  ;;  %v3959_v27 = vadd.f32 -1.0, %v4813_v6  ;;  %vm3367_vm6 = vcmp.gt.f32.partialorder %v3360_v43, 0.0  ;;  %p4825_p0 = scmp.ne.s32.totalorder %s3681_s28, %s4824_s0  ;;  %p4830_p2 = scmp.lt.s32.totalorder %s4824_s0, %s4824_s0 }
 0xa82   :  { %v4639_v11 = vpop.f32.mrf.mxu1 }
 0xa83   :  { %4820 = vpow2.f32 %v3379_v24  ;;  %v3361_v15 = vadd.f32 %v3957_v32, %v3346_v47  ;;  %v3391_v23 = vsel %vm3363_vm13, %v3356_v51, %v3959_v27  ;;  %p4831_p3 = por %p4830_p2, %p4829_p1 }
 0xa84   :  { %v4815_v52 = vpop.eup %4814  ;;  %4648 = vmatmul.mubr.msk.f32.gmra.mxu0 %vm328_vm4, %v3391_v23 }
 0xa85   :  { %v3381_v30 = vmul.f32 1.442695, %v3361_v15  ;;  %4650 = vmatprep.mubr.msk.f32.mxu0 %vm4848_vm2, %v4847_v29  ;;  %v3960_v37 = vadd.f32 -1.0, %v4815_v52  ;;  %vm3368_vm7 = vcmp.gt.f32.partialorder %v3361_v15, 0.0  ;;  %p4832_p4 = pnand %p4831_p3, %p4825_p0 }
 0xa87   :  { %4822 = vpow2.f32 %v3381_v30  ;;  %v3392_v56 = vsel %vm3364_vm15, %v3357_v36, %v3960_v37 }
 0xa88   :  { %v4817_v33 = vpop.eup %4816  ;;  %4651 = vmatmul.mubr.msk.f32.gmra.mxu0 %vm328_vm4, %v3392_v56 }
 0xa89   :  { %4653 = vmatprep.mubr.msk.f32.mxu0 %vm4848_vm2, %v4847_v29  ;;  %v3961_v42 = vadd.f32 -1.0, %v4817_v33 }
 0xa8b   :  { %v3393_v38 = vsel %vm3365_vm3, %v3358_v26, %v3961_v42 }
 0xa8c   :  { %v4819_v57 = vpop.eup %4818  ;;  %4654 = vmatmul.mubr.msk.f32.gmra.mxu0 %vm328_vm4, %v3393_v38 }
 0xa8d   :  { %4656 = vmatprep.mubr.msk.f32.mxu0 %vm4848_vm2, %v4847_v29  ;;  %v3962_v32 = vadd.f32 -1.0, %v4819_v57 }
 0xa8f   :  { %v3394_v0 = vsel %vm3366_vm5, %v3359_v3, %v3962_v32 }
 0xa90   :  { %v4821_v48 = vpop.eup %4820  ;;  %4657 = vmatmul.mubr.msk.f32.gmra.mxu0 %vm328_vm4, %v3394_v0 }
 0xa91   :  { %4659 = vmatprep.mubr.msk.f32.mxu0 %vm4848_vm2, %v4847_v29  ;;  %v3963_v49 = vadd.f32 -1.0, %v4821_v48 }
 0xa93   :  { %v3395_v39 = vsel %vm3367_vm6, %v3360_v43, %v3963_v49 }
 0xa94   :  { %v4823_v53 = vpop.eup %4822  ;;  %4660 = vmatmul.mubr.msk.f32.gmra.mxu0 %vm328_vm4, %v3395_v39 }
 0xa95   :  { %4662 = vmatprep.mubr.msk.f32.mxu0 %vm4848_vm2, %v4847_v29  ;;  %v3964_v61 = vadd.f32 -1.0, %v4823_v53 }
 0xa97   :  { %v3396_v58 = vsel %vm3368_vm7, %v3361_v15, %v3964_v61 }
 0xa98   :  { %4663 = vmatmul.mubr.msk.f32.gmra.mxu0 %vm328_vm4, %v3396_v58 }
 0xb40   :  { %v3495_v8 = vpop.f32.mrf.mxu0 }
 0xb41   :  { %v3496_v46 = vadd.f32 %v3968_v35, %v3495_v8 }
 0xb42   :  { %v4646_v45 = vpop.f32.mrf.mxu0 }
 0xb43   :  { %v3529_v51 = vadd.f32 %v3496_v46, %v5731_v17 }
 0xb44   :  { %v3500_v4 = vpop.f32.mrf.mxu0 }
 0xb45   :  { %v3501_v50 = vadd.f32 %v3968_v35, %v3500_v4  ;;  %4674 = vmatmul.mubr.msk.f32.vlgmr.msra.gmra.mxu1 %vm158_vm1, %v3529_v51 }
 0xb46   :  { %v4649_v5 = vpop.f32.mrf.mxu0  ;;  %4676 = vmatprep.mubr.msk.f32.mxu1 %vm4848_vm2, %v4847_v29 }
 0xb47   :  { %v3530_v41 = vadd.f32 %v3501_v50, %v5735_v34 }
 0xb48   :  { %v3505_v1 = vpop.f32.mrf.mxu0 }
 0xb49   :  { %v3506_v36 = vadd.f32 %v3968_v35, %v3505_v1  ;;  %4677 = vmatmul.mubr.msk.f32.gmra.mxu1 %vm158_vm1, %v3530_v41 }
 0xb4a   :  { %v4652_v60 = vpop.f32.mrf.mxu0  ;;  %4679 = vmatprep.mubr.msk.f32.mxu1 %vm4848_vm2, %v4847_v29 }
 0xb4b   :  { %v3531_v17 = vadd.f32 %v3506_v36, %v5739_v22 }
 0xb4c   :  { %v3510_v16 = vpop.f32.mrf.mxu0 }
 0xb4d   :  { %v3511_v59 = vadd.f32 %v3968_v35, %v3510_v16  ;;  %4680 = vmatmul.mubr.msk.f32.gmra.mxu1 %vm158_vm1, %v3531_v17 }
 0xb4e   :  { %v4655_v19 = vpop.f32.mrf.mxu0  ;;  %4682 = vmatprep.mubr.msk.f32.mxu1 %vm4848_vm2, %v4847_v29 }
 0xb4f   :  { %v3532_v34 = vadd.f32 %v3511_v59, %v5743_v25 }
 0xb50   :  { %v3515_v21 = vpop.f32.mrf.mxu0 }
 0xb51   :  { %v3516_v26 = vadd.f32 %v3968_v35, %v3515_v21  ;;  %4683 = vmatmul.mubr.msk.f32.gmra.mxu1 %vm158_vm1, %v3532_v34 }
 0xb52   :  { %v4658_v54 = vpop.f32.mrf.mxu0  ;;  %4685 = vmatprep.mubr.msk.f32.mxu1 %vm4848_vm2, %v4847_v29 }
 0xb53   :  { %v3533_v22 = vadd.f32 %v3516_v26, %v5747_v44 }
 0xb54   :  { %v3520_v9 = vpop.f32.mrf.mxu0 }
 0xb55   :  { %v3521_v13 = vadd.f32 %v3968_v35, %v3520_v9  ;;  %4686 = vmatmul.mubr.msk.f32.gmra.mxu1 %vm158_vm1, %v3533_v22 }
 0xb56   :  { %v4661_v14 = vpop.f32.mrf.mxu0  ;;  %4688 = vmatprep.mubr.msk.f32.mxu1 %vm4848_vm2, %v4847_v29 }
 0xb57   :  { %v3534_v25 = vadd.f32 %v3521_v13, %v5755_v28 }
 0xb58   :  { %v3525_v55 = vpop.f32.mrf.mxu0 }
 0xb59   :  { %v3526_v3 = vadd.f32 %v3968_v35, %v3525_v55  ;;  %4689 = vmatmul.mubr.msk.f32.gmra.mxu1 %vm158_vm1, %v3534_v25 }
 0xb5a   :  { %v4664_v18 = vpop.f32.mrf.mxu0  ;;  %4691 = vmatprep.mubr.msk.f32.mxu1 %vm4848_vm2, %v4847_v29 }
 0xb5b   :  { %v3535_v44 = vadd.f32 %v3526_v3, %v5773_v62 }
 0xb5d   :  { %4692 = vmatmul.mubr.msk.f32.gmra.mxu1 %vm158_vm1, %v3535_v44 }
 0xc05   :  { %v3634_v63 = vpop.f32.mrf.mxu1 }
 0xc06   :  { %v3635_v2 = vadd.f32 %v3976_v10, %v3634_v63 }
 0xc07   :  { %v4675_v7 = vpop.f32.mrf.mxu1 }
 0xc08   :  { %3668 = vst [vmem:[#allocation2] sm:$0xff] %v3635_v2 }
 0xc09   :  { %v3639_v28 = vpop.f32.mrf.mxu1 }
 0xc0a   :  { %v3640_v40 = vadd.f32 %v3976_v10, %v3639_v28 }
 0xc0b   :  { %v4678_v20 = vpop.f32.mrf.mxu1 }
 0xc0c   :  { %3669 = vst [vmem:[#allocation2 + $0x8] sm:$0xff] %v3640_v40 }
 0xc0d   :  { %v3644_v31 = vpop.f32.mrf.mxu1 }
 0xc0e   :  { %v3645_v43 = vadd.f32 %v3976_v10, %v3644_v31 }
 0xc0f   :  { %v4681_v6 = vpop.f32.mrf.mxu1 }
 0xc10   :  { %3670 = vst [vmem:[#allocation2 + $0x10] sm:$0xff] %v3645_v43 }
 0xc11   :  { %v3649_v29 = vpop.f32.mrf.mxu1 }
 0xc12   :  { %v3650_v62 = vadd.f32 %v3976_v10, %v3649_v29 }
 0xc13   :  { %v4684_v12 = vpop.f32.mrf.mxu1 }
 0xc14   :  { %3671 = vst [vmem:[#allocation2 + $0x18] sm:$0xff] %v3650_v62 }
 0xc15   :  { %v3654_v24 = vpop.f32.mrf.mxu1 }
 0xc16   :  { %v3655_v47 = vadd.f32 %v3976_v10, %v3654_v24 }
 0xc17   :  { %v4687_v27 = vpop.f32.mrf.mxu1 }
 0xc18   :  { %3672 = vst [vmem:[#allocation2 + $0x20] sm:$0xff] %v3655_v47 }
 0xc19   :  { %v3659_v11 = vpop.f32.mrf.mxu1 }
 0xc1a   :  { %v3660_v15 = vadd.f32 %v3976_v10, %v3659_v11 }
 0xc1b   :  { %v4690_v23 = vpop.f32.mrf.mxu1 }
 0xc1c   :  { %3673 = vst [vmem:[#allocation2 + $0x28] sm:$0xff] %v3660_v15 }
 0xc1d   :  { %v3664_v52 = vpop.f32.mrf.mxu1 }
 0xc1e   :  { %v3665_v30 = vadd.f32 %v3976_v10, %v3664_v52 }
 0xc1f   :  { %v4693_v37 = vpop.f32.mrf.mxu1 }
 0xc20   :  { %3674 = vst [vmem:[#allocation2 + $0x30] sm:$0xf] %v3665_v30 }
 0xc21   :  { %4835 = shalt.err (!%p4832_p4)
}
 0xc22   :  { %s4850_s29 = smov 128   ;;  %s4851_s30 = smov 8  }
 0xc23   :  { %3686 = dma.vmem_to_hbm [thread:$0]  %s3681_s28, 896, %s5993_s15, [#allocation3], %s4850_s29, %s4850_s29, %s4851_s30  }
 0xc24   :  { %4844 = dma.done.wait [#allocation3], 896  }
 0xc25   :  { %4845 = vsyncadd [#allocation3], 4294966400 }
 0xc26   :  { %3690 = vsyncpa [#allocation3], 1 }

</bundles_post_ra>
